<compile_context>
chip_gen: v7x
topology: tpu7x:2x2x1
jax: 0.10.0
libtpu: 0.0.40
codegen_flags: <defaults>
</compile_context>

<pallas_src>
import functools

import jax
import jax.numpy as jnp
from jax.experimental import pallas as pl
from jax.experimental.pallas import tpu as pltpu


# Probe once whether this JAX build supports pipeline_mode=pl.Buffered(1); if not,
# fall back to the default (double-buffered) specs so the kernel still runs.
try:
    pl.BlockSpec((8, 128), lambda i: (0, 0), pipeline_mode=pl.Buffered(1))
    _WEIGHT_PIPELINE_KW = dict(pipeline_mode=pl.Buffered(1))
except Exception:  # pragma: no cover - older JAX
    _WEIGHT_PIPELINE_KW = {}


# ----------------------------------------------------------------------------
# Fused decoder-layer kernel (one grid step == one batch element)
# ----------------------------------------------------------------------------
def _decoder_layer_kernel(trg_ref, src_ref, tb_ref, sb_ref,
                          wqkv_ref, bqkv_ref, wo_ref, bo_ref,
                          w1_ref, b1_ref, w2_ref, b2_ref,
                          g_ref, bt_ref, o_ref, ctx_ref, *, num_heads, eps):
    f32 = jnp.float32
    bf16 = jnp.bfloat16
    D = wo_ref.shape[0]                     # wo kept as (D, D)
    Dh = D // num_heads

    def mm(a, b):
        # bf16 x bf16 operands, f32 accumulation on the MXU
        return jnp.dot(a, b, preferred_element_type=f32)

    trg = trg_ref[0]                        # (St, D)  bf16
    src = src_ref[0]                        # (Ss, D)  bf16
    t_bias = tb_ref[0].astype(f32)          # (St, St) additive mask bias (0 / -1e9)
    s_bias = sb_ref[0].astype(f32)          # (St, Ss)
    wqkv = wqkv_ref[...]                    # (D, 3D) bf16, 1/sqrt(Dh) folded into Q cols
    bqkv = bqkv_ref[...].astype(f32)        # (1, 3D)
    wo = wo_ref[...]                        # (D, D)  bf16
    bo = bo_ref[...].astype(f32)            # (1, D)
    gamma = g_ref[...].astype(f32)          # (1, D)
    beta = bt_ref[...].astype(f32)          # (1, D)

    def add_layernorm(x, res):              # f32 in -> f32 out
        y = x + res
        mu = jnp.mean(y, axis=-1, keepdims=True)
        var = jnp.mean(jnp.square(y - mu), axis=-1, keepdims=True)
        return (y - mu) * jax.lax.rsqrt(var + eps) * gamma + beta

    def mha(x_q, x_kv, bias):               # bf16 activations, f32 bias -> f32 out
        # Fused QKV projection: one (S, D) @ (D, 3D) matmul per stream.
        # Post-bias activations kept in bf16 (they only feed further matmuls).
        qkv_q = (mm(x_q, wqkv) + bqkv).astype(bf16)
        qkv_kv = (mm(x_kv, wqkv) + bqkv).astype(bf16)
        # TODO(synk): at production sizes make Dh a multiple of 128 (or use a
        # batched (H, S, Dh) einsum) so these per-head slices are whole lane tiles.
        for h in range(num_heads):           # static unroll over heads
            lo = h * Dh
            q_h = qkv_q[:, lo:lo + Dh]                     # (Sq, Dh)
            k_h = qkv_kv[:, D + lo:D + lo + Dh]            # (Sk, Dh)
            v_h = qkv_kv[:, 2 * D + lo:2 * D + lo + Dh]    # (Sk, Dh)
            s = jnp.einsum('qd,kd->qk', q_h, k_h,
                           preferred_element_type=f32) + bias
            s = s - jnp.max(s, axis=-1, keepdims=True)
            p = jnp.exp(s)
            p = p * pl.reciprocal(jnp.sum(p, axis=-1, keepdims=True), approx=True)
            # Gather every head's output into one lane-contiguous (Sq, D) block ...
            ctx_ref[:, lo:lo + Dh] = mm(p.astype(bf16), v_h)
        # ... so the output projection is ONE full-K (K = D) MXU matmul instead of
        # num_heads matmuls with K = Dh.
        return mm(ctx_ref[...].astype(bf16), wo) + bo

    # masked self-attention + add & norm (dropout == identity in eval mode)
    trg_f32 = trg.astype(f32)
    h1 = add_layernorm(mha(trg, trg, t_bias), trg_f32)
    # cross-attention (same MHA weights, same LayerNorm) + add & norm
    h2 = add_layernorm(mha(h1.astype(bf16), src, s_bias), h1)
    # feed-forward (w1 -> ReLU -> w2) + add & norm; hidden kept in bf16
    f = jnp.maximum(mm(h2.astype(bf16), w1_ref[...]) + b1_ref[...].astype(f32), 0.0)
    f = mm(f.astype(bf16), w2_ref[...]) + b2_ref[...].astype(f32)
    o_ref[0] = add_layernorm(f, h2).astype(o_ref.dtype)
    # TODO(synk): for St >= 512 add a query-tile grid axis with flash-style online
    # softmax (m/l VMEM accumulators + pl.when init/finalize) and a tiled FFN so
    # VMEM stays bounded instead of materializing (St, St) scores / (St, F) hidden.


# ----------------------------------------------------------------------------
# VMEM budgeting
# ----------------------------------------------------------------------------
def _vmem_budget_bytes():
    """~75% of physical VMEM: ~96 MiB on v5e/v6e (128 MiB), ~48 MiB on v7x (64 MiB)."""
    try:
        cap = int(pltpu.get_tpu_info().vmem_capacity_bytes)
    except Exception:
        cap = 64 * 1024 * 1024          # conservative fallback (v7x per-core VMEM)
    return (cap * 3) // 4


def _fused_vmem_bytes(St, Ss, D, F):
    bf2, f4 = 2, 4
    Smax = max(St, Ss)
    # resident weights (bf16, single-buffered) + f32 biases / LN params
    weights = bf2 * (3 * D * D + D * D + D * F + F * D)
    biases = f4 * (3 * D + D + F + D + 2 * D)
    # per-batch pipeline blocks (double-buffered): bf16 activations/masks, f32 out
    blocks = 2 * (bf2 * (St * D + Ss * D + St * St + St * Ss) + f4 * St * D)
    # dominant live in-kernel temporaries
    temps = (bf2 * (St + Smax) * 3 * D          # qkv_q / qkv_kv (bf16)
             + f4 * 2 * St * Smax               # one head's scores + probs (f32)
             + f4 * 4 * St * D                  # ctx scratch, h1, h2, attn out (f32)
             + (bf2 + f4) * St * F)             # FFN hidden (f32 acc + bf16 copy)
    return weights + biases + blocks + temps


def _mask_to_bias(mask, B, Sq, Sk, name):
    mask = jnp.asarray(mask)
    if mask.ndim == 4:
        if mask.shape[1] != 1:
            raise ValueError(
                f"{name}: per-head masks of shape {mask.shape} are not supported; "
                "pass (B, 1, Sq, Sk) or (B, Sq, Sk).")
        mask = mask[:, 0]
    mask = jnp.broadcast_to(mask, (B, Sq, Sk))
    # Additive bias in bf16 (0 visible / -1e9 masked): halves HBM traffic of the
    # largest per-batch input vs. an f32 bias.
    # TODO(synk): for causal / pad-length masks, generate this bias in-kernel
    # (broadcasted_iota compare + SMEM pad lengths via PrefetchScalarGridSpec)
    # instead of streaming it from HBM at all.
    return jnp.where(mask == 0, jnp.float32(-1e9), jnp.float32(0.0)).astype(jnp.bfloat16)


# ----------------------------------------------------------------------------
# Wrapper
# ----------------------------------------------------------------------------
def decoder_layer_forward(params, src, trg, s_mask, t_mask, num_heads, eps=1e-5):
    B, St, D = trg.shape
    Ss = src.shape[1]
    F = params["ffn"]["w1"].shape[1]
    H = num_heads
    assert D % H == 0, "d_model must be divisible by num_heads"
    Dh = D // H
    cdt = jnp.bfloat16

    vmem_limit = _vmem_budget_bytes()
    need = _fused_vmem_bytes(St, Ss, D, F)
    assert need < vmem_limit, (
        f"fused decoder layer needs ~{need / 2**20:.1f} MiB VMEM, budget is "
        f"{vmem_limit / 2**20:.1f} MiB")
    # TODO(synk): above this budget, switch to the flash-style query-tiled path.

    mha_p = params["mha"]
    scale = jnp.float32(Dh ** -0.5)
    # Fused (D, 3D) QKV weight; 1/sqrt(Dh) folded into the Q projection + bias.
    wqkv = jnp.concatenate(
        [mha_p["wq"] * scale, mha_p["wk"], mha_p["wv"]], axis=1).astype(cdt)
    bqkv = jnp.concatenate(
        [mha_p["bq"] * scale, mha_p["bk"], mha_p["bv"]]).reshape(1, 3 * D)
    bqkv = bqkv.astype(jnp.float32)
    wo = mha_p["wo"].astype(cdt)                # kept (D, D): single full-K out-proj
    bo = mha_p["bo"].reshape(1, D).astype(jnp.float32)
    w1 = params["ffn"]["w1"].astype(cdt)
    b1 = params["ffn"]["b1"].reshape(1, F).astype(jnp.float32)
    w2 = params["ffn"]["w2"].astype(cdt)
    b2 = params["ffn"]["b2"].reshape(1, D).astype(jnp.float32)
    g = params["ln_g"].reshape(1, D).astype(jnp.float32)
    bt = params["ln_b"].reshape(1, D).astype(jnp.float32)

    # bf16 activations halve HBM traffic; kernel upcasts to f32 for LN/softmax.
    trg_bf = trg.astype(cdt)
    src_bf = src.astype(cdt)
    t_bias = _mask_to_bias(t_mask, B, St, St, "t_mask")
    s_bias = _mask_to_bias(s_mask, B, St, Ss, "s_mask")

    def _batch_spec(s1, s2):
        return pl.BlockSpec((1, s1, s2), lambda b: (b, 0, 0))

    def _resident_spec(shape):
        # Constant index_map => block never changes across the grid; single
        # buffering halves its resident VMEM vs. the default double buffer.
        zeros = (0,) * len(shape)
        return pl.BlockSpec(shape, lambda b, _z=zeros: _z, **_WEIGHT_PIPELINE_KW)

    kernel = functools.partial(_decoder_layer_kernel, num_heads=H, eps=eps)
    return pl.pallas_call(
        kernel,
        out_shape=jax.ShapeDtypeStruct((B, St, D), trg.dtype),
        grid=(B,),
        in_specs=[
            _batch_spec(St, D),            # trg   (bf16)
            _batch_spec(Ss, D),            # src   (bf16)
            _batch_spec(St, St),           # t_bias (bf16)
            _batch_spec(St, Ss),           # s_bias (bf16)
            _resident_spec((D, 3 * D)),    # wqkv
            _resident_spec((1, 3 * D)),    # bqkv
            _resident_spec((D, D)),        # wo
            _resident_spec((1, D)),        # bo
            _resident_spec((D, F)),        # w1
            _resident_spec((1, F)),        # b1
            _resident_spec((F, D)),        # w2
            _resident_spec((1, D)),        # b2
            _resident_spec((1, D)),        # ln gamma
            _resident_spec((1, D)),        # ln beta
        ],
        out_specs=pl.BlockSpec((1, St, D), lambda b: (b, 0, 0)),
        scratch_shapes=[pltpu.VMEM((St, D), jnp.float32)],   # per-head ctx gather
        compiler_params=pltpu.CompilerParams(
            dimension_semantics=("parallel",),   # megacore: batch across TCs (v7x needs B>=2)
            vmem_limit_bytes=vmem_limit),
    )(trg_bf, src_bf, t_bias, s_bias, wqkv, bqkv, wo, bo, w1, b1, w2, b2, g, bt)


# ----------------------------------------------------------------------------
# Pure-JAX reference (f32) for correctness checking
# ----------------------------------------------------------------------------
def decoder_layer_reference(params, src, trg, s_mask, t_mask, num_heads, eps=1e-5):
    g, b = params["ln_g"], params["ln_b"]

    def ln(x):
        mu = x.mean(-1, keepdims=True)
        var = ((x - mu) ** 2).mean(-1, keepdims=True)
        return (x - mu) / jnp.sqrt(var + eps) * g + b

    def mha(q, k, v, mask):
        p = params["mha"]
        B, Sq, D = q.shape
        Sk = k.shape[1]
        Dh = D // num_heads
        qp = (q @ p["wq"] + p["bq"]).reshape(B, Sq, num_heads, Dh).transpose(0, 2, 1, 3)
        kp = (k @ p["wk"] + p["bk"]).reshape(B, Sk, num_heads, Dh).transpose(0, 2, 1, 3)
        vp = (v @ p["wv"] + p["bv"]).reshape(B, Sk, num_heads, Dh).transpose(0, 2, 1, 3)
        s = jnp.einsum('bhqd,bhkd->bhqk', qp, kp) / (Dh ** 0.5)
        s = jnp.where(mask == 0, -1e9, s)
        a = jax.nn.softmax(s, axis=-1)
        o = jnp.einsum('bhqk,bhkd->bhqd', a, vp).transpose(0, 2, 1, 3).reshape(B, Sq, D)
        return o @ p["wo"] + p["bo"]

    x = ln(mha(trg, trg, trg, t_mask) + trg)
    x = ln(mha(x, src, src, s_mask) + x)
    f = jnp.maximum(x @ params["ffn"]["w1"] + params["ffn"]["b1"], 0.0)
    f = f @ params["ffn"]["w2"] + params["ffn"]["b2"]
    return ln(f + x)


# ----------------------------------------------------------------------------
# Deterministic parameter init
# ----------------------------------------------------------------------------
def init_params(key, d_model, d_ff):
    ks = jax.random.split(key, 8)
    s = 0.02

    def w(k, shape):
        return jax.random.normal(k, shape, jnp.float32) * s

    return {
        "mha": {
            "wq": w(ks[0], (d_model, d_model)), "bq": jnp.zeros((d_model,), jnp.float32),
            "wk": w(ks[1], (d_model, d_model)), "bk": jnp.zeros((d_model,), jnp.float32),
            "wv": w(ks[2], (d_model, d_model)), "bv": jnp.zeros((d_model,), jnp.float32),
            "wo": w(ks[3], (d_model, d_model)), "bo": jnp.zeros((d_model,), jnp.float32),
        },
        "ffn": {
            "w1": w(ks[4], (d_model, d_ff)), "b1": jnp.zeros((d_ff,), jnp.float32),
            "w2": w(ks[5], (d_ff, d_model)), "b2": jnp.zeros((d_model,), jnp.float32),
        },
        "ln_g": jnp.ones((d_model,), jnp.float32),
        "ln_b": jnp.zeros((d_model,), jnp.float32),
    }


if __name__ == "__main__":
    B, S_trg, S_src = 2, 8, 8
    d_model, d_ff, num_heads, prob = 32, 64, 4, 0.1   # prob unused (eval-mode dropout)

    key = jax.random.PRNGKey(0)
    k_src, k_trg, k_par = jax.random.split(key, 3)

    src = jax.random.normal(k_src, (B, S_src, d_model), jnp.float32)
    trg = jax.random.normal(k_trg, (B, S_trg, d_model), jnp.float32)

    # target mask: causal; source mask: all-visible padding mask of ones
    t_mask = jnp.tril(jnp.ones((S_trg, S_trg), jnp.float32))[None, None, :, :]
    t_mask = jnp.broadcast_to(t_mask, (B, 1, S_trg, S_trg))
    s_mask = jnp.ones((B, 1, S_trg, S_src), jnp.float32)

    params = init_params(k_par, d_model, d_ff)

    fwd = jax.jit(functools.partial(decoder_layer_forward, num_heads=num_heads))
    out = fwd(params, src, trg, s_mask, t_mask)
    jax.block_until_ready(out)

    assert out.shape == (B, S_trg, d_model)
    assert bool(jnp.all(jnp.isfinite(out)))

    # numerics vs. f32 reference (kernel runs bf16 operands with f32 accumulation)
    ref = decoder_layer_reference(params, src, trg, s_mask, t_mask, num_heads)
    assert bool(jnp.allclose(out, ref, rtol=5e-2, atol=5e-2)), \
        f"max abs diff {float(jnp.max(jnp.abs(out - ref)))}"

    print("KERNEL_OK")
</pallas_src>

<mosaic_0001>
module attributes {stable_mosaic.version = 11 : i64} {
  func.func @_decoder_layer_kernel(%arg0: i32, %arg1: memref<1x8x32xbf16, #tpu.memory_space<vmem>>, %arg2: memref<1x8x32xbf16, #tpu.memory_space<vmem>>, %arg3: memref<1x8x8xbf16, #tpu.memory_space<vmem>>, %arg4: memref<1x8x8xbf16, #tpu.memory_space<vmem>>, %arg5: memref<32x96xbf16, #tpu.memory_space<vmem>>, %arg6: memref<1x96xf32, #tpu.memory_space<vmem>>, %arg7: memref<32x32xbf16, #tpu.memory_space<vmem>>, %arg8: memref<1x32xf32, #tpu.memory_space<vmem>>, %arg9: memref<32x64xbf16, #tpu.memory_space<vmem>>, %arg10: memref<1x64xf32, #tpu.memory_space<vmem>>, %arg11: memref<64x32xbf16, #tpu.memory_space<vmem>>, %arg12: memref<1x32xf32, #tpu.memory_space<vmem>>, %arg13: memref<1x32xf32, #tpu.memory_space<vmem>>, %arg14: memref<1x32xf32, #tpu.memory_space<vmem>>, %arg15: memref<1x8x32xf32, #tpu.memory_space<vmem>>, %arg16: memref<8x32xf32, #tpu.memory_space<vmem>>) attributes {dimension_semantics = [#tpu.dimension_semantics<parallel>], iteration_bounds = array<i64: 2>, scalar_prefetch = 0 : i64, scratch_operands = 1 : i64, tpu.core_type = #tpu.core_type<tc>, window_params = [{transform_indices = @transform_0, window_bounds = array<i64: 1, 8, 32>}, {transform_indices = @transform_1, window_bounds = array<i64: 1, 8, 32>}, {transform_indices = @transform_2, window_bounds = array<i64: 1, 8, 8>}, {transform_indices = @transform_3, window_bounds = array<i64: 1, 8, 8>}, {pipeline_mode = #tpu.pipeline_mode<synchronous>, transform_indices = @transform_4, window_bounds = array<i64: 32, 96>}, {pipeline_mode = #tpu.pipeline_mode<synchronous>, transform_indices = @transform_5, window_bounds = array<i64: 1, 96>}, {pipeline_mode = #tpu.pipeline_mode<synchronous>, transform_indices = @transform_6, window_bounds = array<i64: 32, 32>}, {pipeline_mode = #tpu.pipeline_mode<synchronous>, transform_indices = @transform_7, window_bounds = array<i64: 1, 32>}, {pipeline_mode = #tpu.pipeline_mode<synchronous>, transform_indices = @transform_8, window_bounds = array<i64: 32, 64>}, {pipeline_mode = #tpu.pipeline_mode<synchronous>, transform_indices = @transform_9, window_bounds = array<i64: 1, 64>}, {pipeline_mode = #tpu.pipeline_mode<synchronous>, transform_indices = @transform_10, window_bounds = array<i64: 64, 32>}, {pipeline_mode = #tpu.pipeline_mode<synchronous>, transform_indices = @transform_11, window_bounds = array<i64: 1, 32>}, {pipeline_mode = #tpu.pipeline_mode<synchronous>, transform_indices = @transform_12, window_bounds = array<i64: 1, 32>}, {pipeline_mode = #tpu.pipeline_mode<synchronous>, transform_indices = @transform_13, window_bounds = array<i64: 1, 32>}, {transform_indices = @transform_14, window_bounds = array<i64: 1, 8, 32>}]} {
    %c0 = arith.constant 0 : index
    %c0_0 = arith.constant 0 : index
    %c0_1 = arith.constant 0 : index
    %0 = vector.load %arg1[%c0, %c0_0, %c0_1] : memref<1x8x32xbf16, #tpu.memory_space<vmem>>, vector<1x8x32xbf16>
    %1 = vector.shape_cast %0 : vector<1x8x32xbf16> to vector<8x32xbf16>
    %c0_2 = arith.constant 0 : index
    %c0_3 = arith.constant 0 : index
    %c0_4 = arith.constant 0 : index
    %2 = vector.load %arg2[%c0_2, %c0_3, %c0_4] : memref<1x8x32xbf16, #tpu.memory_space<vmem>>, vector<1x8x32xbf16>
    %3 = vector.shape_cast %2 : vector<1x8x32xbf16> to vector<8x32xbf16>
    %c0_5 = arith.constant 0 : index
    %c0_6 = arith.constant 0 : index
    %c0_7 = arith.constant 0 : index
    %4 = vector.load %arg3[%c0_5, %c0_6, %c0_7] : memref<1x8x8xbf16, #tpu.memory_space<vmem>>, vector<1x8x8xbf16>
    %5 = vector.shape_cast %4 : vector<1x8x8xbf16> to vector<8x8xbf16>
    %6 = arith.extf %5 : vector<8x8xbf16> to vector<8x8xf32>
    %c0_8 = arith.constant 0 : index
    %c0_9 = arith.constant 0 : index
    %c0_10 = arith.constant 0 : index
    %7 = vector.load %arg4[%c0_8, %c0_9, %c0_10] : memref<1x8x8xbf16, #tpu.memory_space<vmem>>, vector<1x8x8xbf16>
    %8 = vector.shape_cast %7 : vector<1x8x8xbf16> to vector<8x8xbf16>
    %9 = arith.extf %8 : vector<8x8xbf16> to vector<8x8xf32>
    %c0_11 = arith.constant 0 : index
    %c0_12 = arith.constant 0 : index
    %10 = vector.load %arg5[%c0_11, %c0_12] : memref<32x96xbf16, #tpu.memory_space<vmem>>, vector<32x96xbf16>
    %c0_13 = arith.constant 0 : index
    %c0_14 = arith.constant 0 : index
    %11 = vector.load %arg6[%c0_13, %c0_14] : memref<1x96xf32, #tpu.memory_space<vmem>>, vector<1x96xf32>
    %c0_15 = arith.constant 0 : index
    %c0_16 = arith.constant 0 : index
    %12 = vector.load %arg7[%c0_15, %c0_16] : memref<32x32xbf16, #tpu.memory_space<vmem>>, vector<32x32xbf16>
    %c0_17 = arith.constant 0 : index
    %c0_18 = arith.constant 0 : index
    %13 = vector.load %arg8[%c0_17, %c0_18] : memref<1x32xf32, #tpu.memory_space<vmem>>, vector<1x32xf32>
    %c0_19 = arith.constant 0 : index
    %c0_20 = arith.constant 0 : index
    %14 = vector.load %arg13[%c0_19, %c0_20] : memref<1x32xf32, #tpu.memory_space<vmem>>, vector<1x32xf32>
    %c0_21 = arith.constant 0 : index
    %c0_22 = arith.constant 0 : index
    %15 = vector.load %arg14[%c0_21, %c0_22] : memref<1x32xf32, #tpu.memory_space<vmem>>, vector<1x32xf32>
    %16 = arith.extf %1 : vector<8x32xbf16> to vector<8x32xf32>
    %cst = arith.constant dense<0.000000e+00> : vector<8x96xf32>
    %17 = tpu.matmul %1, %10, %cst {dimension_numbers = #tpu.dot_dimension_numbers<[1], [0], [0], [1], [0, 0, 1, 1], [], []>} : vector<8x32xbf16>, vector<32x96xbf16>, vector<8x96xf32> -> vector<8x96xf32>
    %18 = vector.broadcast %11 : vector<1x96xf32> to vector<8x96xf32>
    %19 = arith.addf %17, %18 : vector<8x96xf32>
    %20 = arith.truncf %19 : vector<8x96xf32> to vector<8x96xbf16>
    %cst_23 = arith.constant dense<0.000000e+00> : vector<8x96xf32>
    %21 = tpu.matmul %1, %10, %cst_23 {dimension_numbers = #tpu.dot_dimension_numbers<[1], [0], [0], [1], [0, 0, 1, 1], [], []>} : vector<8x32xbf16>, vector<32x96xbf16>, vector<8x96xf32> -> vector<8x96xf32>
    %22 = vector.broadcast %11 : vector<1x96xf32> to vector<8x96xf32>
    %23 = arith.addf %21, %22 : vector<8x96xf32>
    %24 = arith.truncf %23 : vector<8x96xf32> to vector<8x96xbf16>
    %25 = vector.extract_strided_slice %20 {offsets = [0, 0], sizes = [8, 8], strides = [1, 1]} : vector<8x96xbf16> to vector<8x8xbf16>
    %26 = vector.extract_strided_slice %24 {offsets = [0, 32], sizes = [8, 8], strides = [1, 1]} : vector<8x96xbf16> to vector<8x8xbf16>
    %27 = vector.extract_strided_slice %24 {offsets = [0, 64], sizes = [8, 8], strides = [1, 1]} : vector<8x96xbf16> to vector<8x8xbf16>
    "tpu.trace_start"() <{level = 10 : i32, message = "qd,kd->qk"}> : () -> ()
    %cst_24 = arith.constant dense<0.000000e+00> : vector<8x8xf32>
    %28 = tpu.matmul %25, %26, %cst_24 {dimension_numbers = #tpu.dot_dimension_numbers<[1], [1], [0], [0], [0, 0, 1, 0], [], []>} : vector<8x8xbf16>, vector<8x8xbf16>, vector<8x8xf32> -> vector<8x8xf32>
    "tpu.trace_stop"() : () -> ()
    %29 = arith.addf %28, %6 : vector<8x8xf32>
    %cst_25 = arith.constant dense<0xFF800000> : vector<8xf32>
    %30 = vector.multi_reduction <maximumf>, %29, %cst_25 [1] : vector<8x8xf32> to vector<8xf32>
    %31 = vector.shape_cast %30 : vector<8xf32> to vector<8x1xf32>
    %32 = vector.broadcast %31 : vector<8x1xf32> to vector<8x8xf32>
    %33 = arith.subf %29, %32 : vector<8x8xf32>
    %34 = math.exp %33 : vector<8x8xf32>
    %cst_26 = arith.constant dense<0.000000e+00> : vector<8xf32>
    %35 = vector.multi_reduction <add>, %34, %cst_26 [1] : vector<8x8xf32> to vector<8xf32>
    %36 = vector.shape_cast %35 : vector<8xf32> to vector<8x1xf32>
    %37 = tpu.reciprocal %36 {approx = true} : vector<8x1xf32> -> vector<8x1xf32>
    %38 = vector.broadcast %37 : vector<8x1xf32> to vector<8x8xf32>
    %39 = arith.mulf %34, %38 : vector<8x8xf32>
    %40 = arith.truncf %39 : vector<8x8xf32> to vector<8x8xbf16>
    %cst_27 = arith.constant dense<0.000000e+00> : vector<8x8xf32>
    %41 = tpu.matmul %40, %27, %cst_27 {dimension_numbers = #tpu.dot_dimension_numbers<[1], [0], [0], [1], [0, 0, 1, 1], [], []>} : vector<8x8xbf16>, vector<8x8xbf16>, vector<8x8xf32> -> vector<8x8xf32>
    %c0_28 = arith.constant 0 : index
    %c0_29 = arith.constant 0 : index
    %42 = vector.load %arg16[%c0_28, %c0_29] : memref<8x32xf32, #tpu.memory_space<vmem>>, vector<8x8xf32>
    tpu.vector_store %arg16[%c0_28, %c0_29], %41 {strides = array<i32>} : memref<8x32xf32, #tpu.memory_space<vmem>>, vector<8x8xf32>,
    %43 = vector.extract_strided_slice %20 {offsets = [0, 8], sizes = [8, 8], strides = [1, 1]} : vector<8x96xbf16> to vector<8x8xbf16>
    %44 = vector.extract_strided_slice %24 {offsets = [0, 40], sizes = [8, 8], strides = [1, 1]} : vector<8x96xbf16> to vector<8x8xbf16>
    %45 = vector.extract_strided_slice %24 {offsets = [0, 72], sizes = [8, 8], strides = [1, 1]} : vector<8x96xbf16> to vector<8x8xbf16>
    "tpu.trace_start"() <{level = 10 : i32, message = "qd,kd->qk"}> : () -> ()
    %cst_30 = arith.constant dense<0.000000e+00> : vector<8x8xf32>
    %46 = tpu.matmul %43, %44, %cst_30 {dimension_numbers = #tpu.dot_dimension_numbers<[1], [1], [0], [0], [0, 0, 1, 0], [], []>} : vector<8x8xbf16>, vector<8x8xbf16>, vector<8x8xf32> -> vector<8x8xf32>
    "tpu.trace_stop"() : () -> ()
    %47 = arith.addf %46, %6 : vector<8x8xf32>
    %cst_31 = arith.constant dense<0xFF800000> : vector<8xf32>
    %48 = vector.multi_reduction <maximumf>, %47, %cst_31 [1] : vector<8x8xf32> to vector<8xf32>
    %49 = vector.shape_cast %48 : vector<8xf32> to vector<8x1xf32>
    %50 = vector.broadcast %49 : vector<8x1xf32> to vector<8x8xf32>
    %51 = arith.subf %47, %50 : vector<8x8xf32>
    %52 = math.exp %51 : vector<8x8xf32>
    %cst_32 = arith.constant dense<0.000000e+00> : vector<8xf32>
    %53 = vector.multi_reduction <add>, %52, %cst_32 [1] : vector<8x8xf32> to vector<8xf32>
    %54 = vector.shape_cast %53 : vector<8xf32> to vector<8x1xf32>
    %55 = tpu.reciprocal %54 {approx = true} : vector<8x1xf32> -> vector<8x1xf32>
    %56 = vector.broadcast %55 : vector<8x1xf32> to vector<8x8xf32>
    %57 = arith.mulf %52, %56 : vector<8x8xf32>
    %58 = arith.truncf %57 : vector<8x8xf32> to vector<8x8xbf16>
    %cst_33 = arith.constant dense<0.000000e+00> : vector<8x8xf32>
    %59 = tpu.matmul %58, %45, %cst_33 {dimension_numbers = #tpu.dot_dimension_numbers<[1], [0], [0], [1], [0, 0, 1, 1], [], []>} : vector<8x8xbf16>, vector<8x8xbf16>, vector<8x8xf32> -> vector<8x8xf32>
    %c0_34 = arith.constant 0 : index
    %c8 = arith.constant 8 : index
    %60 = vector.load %arg16[%c0_34, %c8] : memref<8x32xf32, #tpu.memory_space<vmem>>, vector<8x8xf32>
    tpu.vector_store %arg16[%c0_34, %c8], %59 {strides = array<i32>} : memref<8x32xf32, #tpu.memory_space<vmem>>, vector<8x8xf32>,
    %61 = vector.extract_strided_slice %20 {offsets = [0, 16], sizes = [8, 8], strides = [1, 1]} : vector<8x96xbf16> to vector<8x8xbf16>
    %62 = vector.extract_strided_slice %24 {offsets = [0, 48], sizes = [8, 8], strides = [1, 1]} : vector<8x96xbf16> to vector<8x8xbf16>
    %63 = vector.extract_strided_slice %24 {offsets = [0, 80], sizes = [8, 8], strides = [1, 1]} : vector<8x96xbf16> to vector<8x8xbf16>
    "tpu.trace_start"() <{level = 10 : i32, message = "qd,kd->qk"}> : () -> ()
    %cst_35 = arith.constant dense<0.000000e+00> : vector<8x8xf32>
    %64 = tpu.matmul %61, %62, %cst_35 {dimension_numbers = #tpu.dot_dimension_numbers<[1], [1], [0], [0], [0, 0, 1, 0], [], []>} : vector<8x8xbf16>, vector<8x8xbf16>, vector<8x8xf32> -> vector<8x8xf32>
    "tpu.trace_stop"() : () -> ()
    %65 = arith.addf %64, %6 : vector<8x8xf32>
    %cst_36 = arith.constant dense<0xFF800000> : vector<8xf32>
    %66 = vector.multi_reduction <maximumf>, %65, %cst_36 [1] : vector<8x8xf32> to vector<8xf32>
    %67 = vector.shape_cast %66 : vector<8xf32> to vector<8x1xf32>
    %68 = vector.broadcast %67 : vector<8x1xf32> to vector<8x8xf32>
    %69 = arith.subf %65, %68 : vector<8x8xf32>
    %70 = math.exp %69 : vector<8x8xf32>
    %cst_37 = arith.constant dense<0.000000e+00> : vector<8xf32>
    %71 = vector.multi_reduction <add>, %70, %cst_37 [1] : vector<8x8xf32> to vector<8xf32>
    %72 = vector.shape_cast %71 : vector<8xf32> to vector<8x1xf32>
    %73 = tpu.reciprocal %72 {approx = true} : vector<8x1xf32> -> vector<8x1xf32>
    %74 = vector.broadcast %73 : vector<8x1xf32> to vector<8x8xf32>
    %75 = arith.mulf %70, %74 : vector<8x8xf32>
    %76 = arith.truncf %75 : vector<8x8xf32> to vector<8x8xbf16>
    %cst_38 = arith.constant dense<0.000000e+00> : vector<8x8xf32>
    %77 = tpu.matmul %76, %63, %cst_38 {dimension_numbers = #tpu.dot_dimension_numbers<[1], [0], [0], [1], [0, 0, 1, 1], [], []>} : vector<8x8xbf16>, vector<8x8xbf16>, vector<8x8xf32> -> vector<8x8xf32>
    %c0_39 = arith.constant 0 : index
    %c16 = arith.constant 16 : index
    %78 = vector.load %arg16[%c0_39, %c16] : memref<8x32xf32, #tpu.memory_space<vmem>>, vector<8x8xf32>
    tpu.vector_store %arg16[%c0_39, %c16], %77 {strides = array<i32>} : memref<8x32xf32, #tpu.memory_space<vmem>>, vector<8x8xf32>,
    %79 = vector.extract_strided_slice %20 {offsets = [0, 24], sizes = [8, 8], strides = [1, 1]} : vector<8x96xbf16> to vector<8x8xbf16>
    %80 = vector.extract_strided_slice %24 {offsets = [0, 56], sizes = [8, 8], strides = [1, 1]} : vector<8x96xbf16> to vector<8x8xbf16>
    %81 = vector.extract_strided_slice %24 {offsets = [0, 88], sizes = [8, 8], strides = [1, 1]} : vector<8x96xbf16> to vector<8x8xbf16>
    "tpu.trace_start"() <{level = 10 : i32, message = "qd,kd->qk"}> : () -> ()
    %cst_40 = arith.constant dense<0.000000e+00> : vector<8x8xf32>
    %82 = tpu.matmul %79, %80, %cst_40 {dimension_numbers = #tpu.dot_dimension_numbers<[1], [1], [0], [0], [0, 0, 1, 0], [], []>} : vector<8x8xbf16>, vector<8x8xbf16>, vector<8x8xf32> -> vector<8x8xf32>
    "tpu.trace_stop"() : () -> ()
    %83 = arith.addf %82, %6 : vector<8x8xf32>
    %cst_41 = arith.constant dense<0xFF800000> : vector<8xf32>
    %84 = vector.multi_reduction <maximumf>, %83, %cst_41 [1] : vector<8x8xf32> to vector<8xf32>
    %85 = vector.shape_cast %84 : vector<8xf32> to vector<8x1xf32>
    %86 = vector.broadcast %85 : vector<8x1xf32> to vector<8x8xf32>
    %87 = arith.subf %83, %86 : vector<8x8xf32>
    %88 = math.exp %87 : vector<8x8xf32>
    %cst_42 = arith.constant dense<0.000000e+00> : vector<8xf32>
    %89 = vector.multi_reduction <add>, %88, %cst_42 [1] : vector<8x8xf32> to vector<8xf32>
    %90 = vector.shape_cast %89 : vector<8xf32> to vector<8x1xf32>
    %91 = tpu.reciprocal %90 {approx = true} : vector<8x1xf32> -> vector<8x1xf32>
    %92 = vector.broadcast %91 : vector<8x1xf32> to vector<8x8xf32>
    %93 = arith.mulf %88, %92 : vector<8x8xf32>
    %94 = arith.truncf %93 : vector<8x8xf32> to vector<8x8xbf16>
    %cst_43 = arith.constant dense<0.000000e+00> : vector<8x8xf32>
    %95 = tpu.matmul %94, %81, %cst_43 {dimension_numbers = #tpu.dot_dimension_numbers<[1], [0], [0], [1], [0, 0, 1, 1], [], []>} : vector<8x8xbf16>, vector<8x8xbf16>, vector<8x8xf32> -> vector<8x8xf32>
    %c0_44 = arith.constant 0 : index
    %c24 = arith.constant 24 : index
    %96 = vector.load %arg16[%c0_44, %c24] : memref<8x32xf32, #tpu.memory_space<vmem>>, vector<8x8xf32>
    tpu.vector_store %arg16[%c0_44, %c24], %95 {strides = array<i32>} : memref<8x32xf32, #tpu.memory_space<vmem>>, vector<8x8xf32>,
    %c0_45 = arith.constant 0 : index
    %c0_46 = arith.constant 0 : index
    %97 = vector.load %arg16[%c0_45, %c0_46] : memref<8x32xf32, #tpu.memory_space<vmem>>, vector<8x32xf32>
    %98 = arith.truncf %97 : vector<8x32xf32> to vector<8x32xbf16>
    %cst_47 = arith.constant dense<0.000000e+00> : vector<8x32xf32>
    %99 = tpu.matmul %98, %12, %cst_47 {dimension_numbers = #tpu.dot_dimension_numbers<[1], [0], [0], [1], [0, 0, 1, 1], [], []>} : vector<8x32xbf16>, vector<32x32xbf16>, vector<8x32xf32> -> vector<8x32xf32>
    %100 = vector.broadcast %13 : vector<1x32xf32> to vector<8x32xf32>
    %101 = arith.addf %99, %100 : vector<8x32xf32>
    %102 = arith.addf %101, %16 : vector<8x32xf32>
    %cst_48 = arith.constant dense<0.000000e+00> : vector<8xf32>
    %103 = vector.multi_reduction <add>, %102, %cst_48 [1] : vector<8x32xf32> to vector<8xf32>
    %104 = vector.shape_cast %103 : vector<8xf32> to vector<8x1xf32>
    %cst_49 = arith.constant 3.200000e+01 : f32
    %105 = vector.broadcast %cst_49 : f32 to vector<8x1xf32>
    %106 = arith.divf %104, %105 : vector<8x1xf32>
    %107 = vector.broadcast %106 : vector<8x1xf32> to vector<8x32xf32>
    %108 = arith.subf %102, %107 : vector<8x32xf32>
    %109 = arith.mulf %108, %108 : vector<8x32xf32>
    %cst_50 = arith.constant dense<0.000000e+00> : vector<8xf32>
    %110 = vector.multi_reduction <add>, %109, %cst_50 [1] : vector<8x32xf32> to vector<8xf32>
    %111 = vector.shape_cast %110 : vector<8xf32> to vector<8x1xf32>
    %cst_51 = arith.constant 3.200000e+01 : f32
    %112 = vector.broadcast %cst_51 : f32 to vector<8x1xf32>
    %113 = arith.divf %111, %112 : vector<8x1xf32>
    %114 = vector.broadcast %106 : vector<8x1xf32> to vector<8x32xf32>
    %115 = arith.subf %102, %114 : vector<8x32xf32>
    %cst_52 = arith.constant 9.99999974E-6 : f32
    %116 = vector.broadcast %cst_52 : f32 to vector<8x1xf32>
    %117 = arith.addf %113, %116 : vector<8x1xf32>
    %118 = math.rsqrt %117 : vector<8x1xf32>
    %119 = vector.broadcast %118 : vector<8x1xf32> to vector<8x32xf32>
    %120 = arith.mulf %115, %119 : vector<8x32xf32>
    %121 = vector.broadcast %14 : vector<1x32xf32> to vector<8x32xf32>
    %122 = arith.mulf %120, %121 : vector<8x32xf32>
    %123 = vector.broadcast %15 : vector<1x32xf32> to vector<8x32xf32>
    %124 = arith.addf %122, %123 : vector<8x32xf32>
    %125 = arith.truncf %124 : vector<8x32xf32> to vector<8x32xbf16>
    %cst_53 = arith.constant dense<0.000000e+00> : vector<8x96xf32>
    %126 = tpu.matmul %125, %10, %cst_53 {dimension_numbers = #tpu.dot_dimension_numbers<[1], [0], [0], [1], [0, 0, 1, 1], [], []>} : vector<8x32xbf16>, vector<32x96xbf16>, vector<8x96xf32> -> vector<8x96xf32>
    %127 = vector.broadcast %11 : vector<1x96xf32> to vector<8x96xf32>
    %128 = arith.addf %126, %127 : vector<8x96xf32>
    %129 = arith.truncf %128 : vector<8x96xf32> to vector<8x96xbf16>
    %cst_54 = arith.constant dense<0.000000e+00> : vector<8x96xf32>
    %130 = tpu.matmul %3, %10, %cst_54 {dimension_numbers = #tpu.dot_dimension_numbers<[1], [0], [0], [1], [0, 0, 1, 1], [], []>} : vector<8x32xbf16>, vector<32x96xbf16>, vector<8x96xf32> -> vector<8x96xf32>
    %131 = vector.broadcast %11 : vector<1x96xf32> to vector<8x96xf32>
    %132 = arith.addf %130, %131 : vector<8x96xf32>
    %133 = arith.truncf %132 : vector<8x96xf32> to vector<8x96xbf16>
    %134 = vector.extract_strided_slice %129 {offsets = [0, 0], sizes = [8, 8], strides = [1, 1]} : vector<8x96xbf16> to vector<8x8xbf16>
    %135 = vector.extract_strided_slice %133 {offsets = [0, 32], sizes = [8, 8], strides = [1, 1]} : vector<8x96xbf16> to vector<8x8xbf16>
    %136 = vector.extract_strided_slice %133 {offsets = [0, 64], sizes = [8, 8], strides = [1, 1]} : vector<8x96xbf16> to vector<8x8xbf16>
    "tpu.trace_start"() <{level = 10 : i32, message = "qd,kd->qk"}> : () -> ()
    %cst_55 = arith.constant dense<0.000000e+00> : vector<8x8xf32>
    %137 = tpu.matmul %134, %135, %cst_55 {dimension_numbers = #tpu.dot_dimension_numbers<[1], [1], [0], [0], [0, 0, 1, 0], [], []>} : vector<8x8xbf16>, vector<8x8xbf16>, vector<8x8xf32> -> vector<8x8xf32>
    "tpu.trace_stop"() : () -> ()
    %138 = arith.addf %137, %9 : vector<8x8xf32>
    %cst_56 = arith.constant dense<0xFF800000> : vector<8xf32>
    %139 = vector.multi_reduction <maximumf>, %138, %cst_56 [1] : vector<8x8xf32> to vector<8xf32>
    %140 = vector.shape_cast %139 : vector<8xf32> to vector<8x1xf32>
    %141 = vector.broadcast %140 : vector<8x1xf32> to vector<8x8xf32>
    %142 = arith.subf %138, %141 : vector<8x8xf32>
    %143 = math.exp %142 : vector<8x8xf32>
    %cst_57 = arith.constant dense<0.000000e+00> : vector<8xf32>
    %144 = vector.multi_reduction <add>, %143, %cst_57 [1] : vector<8x8xf32> to vector<8xf32>
    %145 = vector.shape_cast %144 : vector<8xf32> to vector<8x1xf32>
    %146 = tpu.reciprocal %145 {approx = true} : vector<8x1xf32> -> vector<8x1xf32>
    %147 = vector.broadcast %146 : vector<8x1xf32> to vector<8x8xf32>
    %148 = arith.mulf %143, %147 : vector<8x8xf32>
    %149 = arith.truncf %148 : vector<8x8xf32> to vector<8x8xbf16>
    %cst_58 = arith.constant dense<0.000000e+00> : vector<8x8xf32>
    %150 = tpu.matmul %149, %136, %cst_58 {dimension_numbers = #tpu.dot_dimension_numbers<[1], [0], [0], [1], [0, 0, 1, 1], [], []>} : vector<8x8xbf16>, vector<8x8xbf16>, vector<8x8xf32> -> vector<8x8xf32>
    %c0_59 = arith.constant 0 : index
    %c0_60 = arith.constant 0 : index
    %151 = vector.load %arg16[%c0_59, %c0_60] : memref<8x32xf32, #tpu.memory_space<vmem>>, vector<8x8xf32>
    tpu.vector_store %arg16[%c0_59, %c0_60], %150 {strides = array<i32>} : memref<8x32xf32, #tpu.memory_space<vmem>>, vector<8x8xf32>,
    %152 = vector.extract_strided_slice %129 {offsets = [0, 8], sizes = [8, 8], strides = [1, 1]} : vector<8x96xbf16> to vector<8x8xbf16>
    %153 = vector.extract_strided_slice %133 {offsets = [0, 40], sizes = [8, 8], strides = [1, 1]} : vector<8x96xbf16> to vector<8x8xbf16>
    %154 = vector.extract_strided_slice %133 {offsets = [0, 72], sizes = [8, 8], strides = [1, 1]} : vector<8x96xbf16> to vector<8x8xbf16>
    "tpu.trace_start"() <{level = 10 : i32, message = "qd,kd->qk"}> : () -> ()
    %cst_61 = arith.constant dense<0.000000e+00> : vector<8x8xf32>
    %155 = tpu.matmul %152, %153, %cst_61 {dimension_numbers = #tpu.dot_dimension_numbers<[1], [1], [0], [0], [0, 0, 1, 0], [], []>} : vector<8x8xbf16>, vector<8x8xbf16>, vector<8x8xf32> -> vector<8x8xf32>
    "tpu.trace_stop"() : () -> ()
    %156 = arith.addf %155, %9 : vector<8x8xf32>
    %cst_62 = arith.constant dense<0xFF800000> : vector<8xf32>
    %157 = vector.multi_reduction <maximumf>, %156, %cst_62 [1] : vector<8x8xf32> to vector<8xf32>
    %158 = vector.shape_cast %157 : vector<8xf32> to vector<8x1xf32>
    %159 = vector.broadcast %158 : vector<8x1xf32> to vector<8x8xf32>
    %160 = arith.subf %156, %159 : vector<8x8xf32>
    %161 = math.exp %160 : vector<8x8xf32>
    %cst_63 = arith.constant dense<0.000000e+00> : vector<8xf32>
    %162 = vector.multi_reduction <add>, %161, %cst_63 [1] : vector<8x8xf32> to vector<8xf32>
    %163 = vector.shape_cast %162 : vector<8xf32> to vector<8x1xf32>
    %164 = tpu.reciprocal %163 {approx = true} : vector<8x1xf32> -> vector<8x1xf32>
    %165 = vector.broadcast %164 : vector<8x1xf32> to vector<8x8xf32>
    %166 = arith.mulf %161, %165 : vector<8x8xf32>
    %167 = arith.truncf %166 : vector<8x8xf32> to vector<8x8xbf16>
    %cst_64 = arith.constant dense<0.000000e+00> : vector<8x8xf32>
    %168 = tpu.matmul %167, %154, %cst_64 {dimension_numbers = #tpu.dot_dimension_numbers<[1], [0], [0], [1], [0, 0, 1, 1], [], []>} : vector<8x8xbf16>, vector<8x8xbf16>, vector<8x8xf32> -> vector<8x8xf32>
    %c0_65 = arith.constant 0 : index
    %c8_66 = arith.constant 8 : index
    %169 = vector.load %arg16[%c0_65, %c8_66] : memref<8x32xf32, #tpu.memory_space<vmem>>, vector<8x8xf32>
    tpu.vector_store %arg16[%c0_65, %c8_66], %168 {strides = array<i32>} : memref<8x32xf32, #tpu.memory_space<vmem>>, vector<8x8xf32>,
    %170 = vector.extract_strided_slice %129 {offsets = [0, 16], sizes = [8, 8], strides = [1, 1]} : vector<8x96xbf16> to vector<8x8xbf16>
    %171 = vector.extract_strided_slice %133 {offsets = [0, 48], sizes = [8, 8], strides = [1, 1]} : vector<8x96xbf16> to vector<8x8xbf16>
    %172 = vector.extract_strided_slice %133 {offsets = [0, 80], sizes = [8, 8], strides = [1, 1]} : vector<8x96xbf16> to vector<8x8xbf16>
    "tpu.trace_start"() <{level = 10 : i32, message = "qd,kd->qk"}> : () -> ()
    %cst_67 = arith.constant dense<0.000000e+00> : vector<8x8xf32>
    %173 = tpu.matmul %170, %171, %cst_67 {dimension_numbers = #tpu.dot_dimension_numbers<[1], [1], [0], [0], [0, 0, 1, 0], [], []>} : vector<8x8xbf16>, vector<8x8xbf16>, vector<8x8xf32> -> vector<8x8xf32>
    "tpu.trace_stop"() : () -> ()
    %174 = arith.addf %173, %9 : vector<8x8xf32>
    %cst_68 = arith.constant dense<0xFF800000> : vector<8xf32>
    %175 = vector.multi_reduction <maximumf>, %174, %cst_68 [1] : vector<8x8xf32> to vector<8xf32>
    %176 = vector.shape_cast %175 : vector<8xf32> to vector<8x1xf32>
    %177 = vector.broadcast %176 : vector<8x1xf32> to vector<8x8xf32>
    %178 = arith.subf %174, %177 : vector<8x8xf32>
    %179 = math.exp %178 : vector<8x8xf32>
    %cst_69 = arith.constant dense<0.000000e+00> : vector<8xf32>
    %180 = vector.multi_reduction <add>, %179, %cst_69 [1] : vector<8x8xf32> to vector<8xf32>
    %181 = vector.shape_cast %180 : vector<8xf32> to vector<8x1xf32>
    %182 = tpu.reciprocal %181 {approx = true} : vector<8x1xf32> -> vector<8x1xf32>
    %183 = vector.broadcast %182 : vector<8x1xf32> to vector<8x8xf32>
    %184 = arith.mulf %179, %183 : vector<8x8xf32>
    %185 = arith.truncf %184 : vector<8x8xf32> to vector<8x8xbf16>
    %cst_70 = arith.constant dense<0.000000e+00> : vector<8x8xf32>
    %186 = tpu.matmul %185, %172, %cst_70 {dimension_numbers = #tpu.dot_dimension_numbers<[1], [0], [0], [1], [0, 0, 1, 1], [], []>} : vector<8x8xbf16>, vector<8x8xbf16>, vector<8x8xf32> -> vector<8x8xf32>
    %c0_71 = arith.constant 0 : index
    %c16_72 = arith.constant 16 : index
    %187 = vector.load %arg16[%c0_71, %c16_72] : memref<8x32xf32, #tpu.memory_space<vmem>>, vector<8x8xf32>
    tpu.vector_store %arg16[%c0_71, %c16_72], %186 {strides = array<i32>} : memref<8x32xf32, #tpu.memory_space<vmem>>, vector<8x8xf32>,
    %188 = vector.extract_strided_slice %129 {offsets = [0, 24], sizes = [8, 8], strides = [1, 1]} : vector<8x96xbf16> to vector<8x8xbf16>
    %189 = vector.extract_strided_slice %133 {offsets = [0, 56], sizes = [8, 8], strides = [1, 1]} : vector<8x96xbf16> to vector<8x8xbf16>
    %190 = vector.extract_strided_slice %133 {offsets = [0, 88], sizes = [8, 8], strides = [1, 1]} : vector<8x96xbf16> to vector<8x8xbf16>
    "tpu.trace_start"() <{level = 10 : i32, message = "qd,kd->qk"}> : () -> ()
    %cst_73 = arith.constant dense<0.000000e+00> : vector<8x8xf32>
    %191 = tpu.matmul %188, %189, %cst_73 {dimension_numbers = #tpu.dot_dimension_numbers<[1], [1], [0], [0], [0, 0, 1, 0], [], []>} : vector<8x8xbf16>, vector<8x8xbf16>, vector<8x8xf32> -> vector<8x8xf32>
    "tpu.trace_stop"() : () -> ()
    %192 = arith.addf %191, %9 : vector<8x8xf32>
    %cst_74 = arith.constant dense<0xFF800000> : vector<8xf32>
    %193 = vector.multi_reduction <maximumf>, %192, %cst_74 [1] : vector<8x8xf32> to vector<8xf32>
    %194 = vector.shape_cast %193 : vector<8xf32> to vector<8x1xf32>
    %195 = vector.broadcast %194 : vector<8x1xf32> to vector<8x8xf32>
    %196 = arith.subf %192, %195 : vector<8x8xf32>
    %197 = math.exp %196 : vector<8x8xf32>
    %cst_75 = arith.constant dense<0.000000e+00> : vector<8xf32>
    %198 = vector.multi_reduction <add>, %197, %cst_75 [1] : vector<8x8xf32> to vector<8xf32>
    %199 = vector.shape_cast %198 : vector<8xf32> to vector<8x1xf32>
    %200 = tpu.reciprocal %199 {approx = true} : vector<8x1xf32> -> vector<8x1xf32>
    %201 = vector.broadcast %200 : vector<8x1xf32> to vector<8x8xf32>
    %202 = arith.mulf %197, %201 : vector<8x8xf32>
    %203 = arith.truncf %202 : vector<8x8xf32> to vector<8x8xbf16>
    %cst_76 = arith.constant dense<0.000000e+00> : vector<8x8xf32>
    %204 = tpu.matmul %203, %190, %cst_76 {dimension_numbers = #tpu.dot_dimension_numbers<[1], [0], [0], [1], [0, 0, 1, 1], [], []>} : vector<8x8xbf16>, vector<8x8xbf16>, vector<8x8xf32> -> vector<8x8xf32>
    %c0_77 = arith.constant 0 : index
    %c24_78 = arith.constant 24 : index
    %205 = vector.load %arg16[%c0_77, %c24_78] : memref<8x32xf32, #tpu.memory_space<vmem>>, vector<8x8xf32>
    tpu.vector_store %arg16[%c0_77, %c24_78], %204 {strides = array<i32>} : memref<8x32xf32, #tpu.memory_space<vmem>>, vector<8x8xf32>,
    %c0_79 = arith.constant 0 : index
    %c0_80 = arith.constant 0 : index
    %206 = vector.load %arg16[%c0_79, %c0_80] : memref<8x32xf32, #tpu.memory_space<vmem>>, vector<8x32xf32>
    %207 = arith.truncf %206 : vector<8x32xf32> to vector<8x32xbf16>
    %cst_81 = arith.constant dense<0.000000e+00> : vector<8x32xf32>
    %208 = tpu.matmul %207, %12, %cst_81 {dimension_numbers = #tpu.dot_dimension_numbers<[1], [0], [0], [1], [0, 0, 1, 1], [], []>} : vector<8x32xbf16>, vector<32x32xbf16>, vector<8x32xf32> -> vector<8x32xf32>
    %209 = vector.broadcast %13 : vector<1x32xf32> to vector<8x32xf32>
    %210 = arith.addf %208, %209 : vector<8x32xf32>
    %211 = arith.addf %210, %124 : vector<8x32xf32>
    %cst_82 = arith.constant dense<0.000000e+00> : vector<8xf32>
    %212 = vector.multi_reduction <add>, %211, %cst_82 [1] : vector<8x32xf32> to vector<8xf32>
    %213 = vector.shape_cast %212 : vector<8xf32> to vector<8x1xf32>
    %cst_83 = arith.constant 3.200000e+01 : f32
    %214 = vector.broadcast %cst_83 : f32 to vector<8x1xf32>
    %215 = arith.divf %213, %214 : vector<8x1xf32>
    %216 = vector.broadcast %215 : vector<8x1xf32> to vector<8x32xf32>
    %217 = arith.subf %211, %216 : vector<8x32xf32>
    %218 = arith.mulf %217, %217 : vector<8x32xf32>
    %cst_84 = arith.constant dense<0.000000e+00> : vector<8xf32>
    %219 = vector.multi_reduction <add>, %218, %cst_84 [1] : vector<8x32xf32> to vector<8xf32>
    %220 = vector.shape_cast %219 : vector<8xf32> to vector<8x1xf32>
    %cst_85 = arith.constant 3.200000e+01 : f32
    %221 = vector.broadcast %cst_85 : f32 to vector<8x1xf32>
    %222 = arith.divf %220, %221 : vector<8x1xf32>
    %223 = vector.broadcast %215 : vector<8x1xf32> to vector<8x32xf32>
    %224 = arith.subf %211, %223 : vector<8x32xf32>
    %cst_86 = arith.constant 9.99999974E-6 : f32
    %225 = vector.broadcast %cst_86 : f32 to vector<8x1xf32>
    %226 = arith.addf %222, %225 : vector<8x1xf32>
    %227 = math.rsqrt %226 : vector<8x1xf32>
    %228 = vector.broadcast %227 : vector<8x1xf32> to vector<8x32xf32>
    %229 = arith.mulf %224, %228 : vector<8x32xf32>
    %230 = vector.broadcast %14 : vector<1x32xf32> to vector<8x32xf32>
    %231 = arith.mulf %229, %230 : vector<8x32xf32>
    %232 = vector.broadcast %15 : vector<1x32xf32> to vector<8x32xf32>
    %233 = arith.addf %231, %232 : vector<8x32xf32>
    %234 = arith.truncf %233 : vector<8x32xf32> to vector<8x32xbf16>
    %c0_87 = arith.constant 0 : index
    %c0_88 = arith.constant 0 : index
    %235 = vector.load %arg9[%c0_87, %c0_88] : memref<32x64xbf16, #tpu.memory_space<vmem>>, vector<32x64xbf16>
    %cst_89 = arith.constant dense<0.000000e+00> : vector<8x64xf32>
    %236 = tpu.matmul %234, %235, %cst_89 {dimension_numbers = #tpu.dot_dimension_numbers<[1], [0], [0], [1], [0, 0, 1, 1], [], []>} : vector<8x32xbf16>, vector<32x64xbf16>, vector<8x64xf32> -> vector<8x64xf32>
    %c0_90 = arith.constant 0 : index
    %c0_91 = arith.constant 0 : index
    %237 = vector.load %arg10[%c0_90, %c0_91] : memref<1x64xf32, #tpu.memory_space<vmem>>, vector<1x64xf32>
    %238 = vector.broadcast %237 : vector<1x64xf32> to vector<8x64xf32>
    %239 = arith.addf %236, %238 : vector<8x64xf32>
    %cst_92 = arith.constant 0.000000e+00 : f32
    %240 = vector.broadcast %cst_92 : f32 to vector<8x64xf32>
    %241 = arith.maximumf %239, %240 : vector<8x64xf32>
    %242 = arith.truncf %241 : vector<8x64xf32> to vector<8x64xbf16>
    %c0_93 = arith.constant 0 : index
    %c0_94 = arith.constant 0 : index
    %243 = vector.load %arg11[%c0_93, %c0_94] : memref<64x32xbf16, #tpu.memory_space<vmem>>, vector<64x32xbf16>
    %cst_95 = arith.constant dense<0.000000e+00> : vector<8x32xf32>
    %244 = tpu.matmul %242, %243, %cst_95 {dimension_numbers = #tpu.dot_dimension_numbers<[1], [0], [0], [1], [0, 0, 1, 1], [], []>} : vector<8x64xbf16>, vector<64x32xbf16>, vector<8x32xf32> -> vector<8x32xf32>
    %c0_96 = arith.constant 0 : index
    %c0_97 = arith.constant 0 : index
    %245 = vector.load %arg12[%c0_96, %c0_97] : memref<1x32xf32, #tpu.memory_space<vmem>>, vector<1x32xf32>
    %246 = vector.broadcast %245 : vector<1x32xf32> to vector<8x32xf32>
    %247 = arith.addf %244, %246 : vector<8x32xf32>
    %248 = arith.addf %247, %233 : vector<8x32xf32>
    %cst_98 = arith.constant dense<0.000000e+00> : vector<8xf32>
    %249 = vector.multi_reduction <add>, %248, %cst_98 [1] : vector<8x32xf32> to vector<8xf32>
    %250 = vector.shape_cast %249 : vector<8xf32> to vector<8x1xf32>
    %cst_99 = arith.constant 3.200000e+01 : f32
    %251 = vector.broadcast %cst_99 : f32 to vector<8x1xf32>
    %252 = arith.divf %250, %251 : vector<8x1xf32>
    %253 = vector.broadcast %252 : vector<8x1xf32> to vector<8x32xf32>
    %254 = arith.subf %248, %253 : vector<8x32xf32>
    %255 = arith.mulf %254, %254 : vector<8x32xf32>
    %cst_100 = arith.constant dense<0.000000e+00> : vector<8xf32>
    %256 = vector.multi_reduction <add>, %255, %cst_100 [1] : vector<8x32xf32> to vector<8xf32>
    %257 = vector.shape_cast %256 : vector<8xf32> to vector<8x1xf32>
    %cst_101 = arith.constant 3.200000e+01 : f32
    %258 = vector.broadcast %cst_101 : f32 to vector<8x1xf32>
    %259 = arith.divf %257, %258 : vector<8x1xf32>
    %260 = vector.broadcast %252 : vector<8x1xf32> to vector<8x32xf32>
    %261 = arith.subf %248, %260 : vector<8x32xf32>
    %cst_102 = arith.constant 9.99999974E-6 : f32
    %262 = vector.broadcast %cst_102 : f32 to vector<8x1xf32>
    %263 = arith.addf %259, %262 : vector<8x1xf32>
    %264 = math.rsqrt %263 : vector<8x1xf32>
    %265 = vector.broadcast %264 : vector<8x1xf32> to vector<8x32xf32>
    %266 = arith.mulf %261, %265 : vector<8x32xf32>
    %267 = vector.broadcast %14 : vector<1x32xf32> to vector<8x32xf32>
    %268 = arith.mulf %266, %267 : vector<8x32xf32>
    %269 = vector.broadcast %15 : vector<1x32xf32> to vector<8x32xf32>
    %270 = arith.addf %268, %269 : vector<8x32xf32>
    %c0_103 = arith.constant 0 : index
    %c0_104 = arith.constant 0 : index
    %c0_105 = arith.constant 0 : index
    %271 = vector.load %arg15[%c0_103, %c0_104, %c0_105] : memref<1x8x32xf32, #tpu.memory_space<vmem>>, vector<1x8x32xf32>
    %272 = vector.shape_cast %271 : vector<1x8x32xf32> to vector<8x32xf32>
    %273 = vector.shape_cast %270 : vector<8x32xf32> to vector<1x8x32xf32>
    tpu.vector_store %arg15[%c0_103, %c0_104, %c0_105], %273 {strides = array<i32>} : memref<1x8x32xf32, #tpu.memory_space<vmem>>, vector<1x8x32xf32>,
    return
  }
  func.func @transform_0(%arg0: i32) -> (i32, i32, i32) {
    %c0_i32 = arith.constant 0 : i32
    %c0_i32_0 = arith.constant 0 : i32
    %c0_i32_1 = arith.constant 0 : i32
    return %arg0, %c0_i32, %c0_i32_0 : i32, i32, i32
  }
  func.func @transform_1(%arg0: i32) -> (i32, i32, i32) {
    %c0_i32 = arith.constant 0 : i32
    %c0_i32_0 = arith.constant 0 : i32
    %c0_i32_1 = arith.constant 0 : i32
    return %arg0, %c0_i32, %c0_i32_0 : i32, i32, i32
  }
  func.func @transform_2(%arg0: i32) -> (i32, i32, i32) {
    %c0_i32 = arith.constant 0 : i32
    %c0_i32_0 = arith.constant 0 : i32
    %c0_i32_1 = arith.constant 0 : i32
    return %arg0, %c0_i32, %c0_i32_0 : i32, i32, i32
  }
  func.func @transform_3(%arg0: i32) -> (i32, i32, i32) {
    %c0_i32 = arith.constant 0 : i32
    %c0_i32_0 = arith.constant 0 : i32
    %c0_i32_1 = arith.constant 0 : i32
    return %arg0, %c0_i32, %c0_i32_0 : i32, i32, i32
  }
  func.func @transform_4(%arg0: i32) -> (i32, i32) {
    %c0_i32 = arith.constant 0 : i32
    %c0_i32_0 = arith.constant 0 : i32
    %c0_i32_1 = arith.constant 0 : i32
    return %c0_i32, %c0_i32_0 : i32, i32
  }
  func.func @transform_5(%arg0: i32) -> (i32, i32) {
    %c0_i32 = arith.constant 0 : i32
    %c0_i32_0 = arith.constant 0 : i32
    %c0_i32_1 = arith.constant 0 : i32
    return %c0_i32, %c0_i32_0 : i32, i32
  }
  func.func @transform_6(%arg0: i32) -> (i32, i32) {
    %c0_i32 = arith.constant 0 : i32
    %c0_i32_0 = arith.constant 0 : i32
    %c0_i32_1 = arith.constant 0 : i32
    return %c0_i32, %c0_i32_0 : i32, i32
  }
  func.func @transform_7(%arg0: i32) -> (i32, i32) {
    %c0_i32 = arith.constant 0 : i32
    %c0_i32_0 = arith.constant 0 : i32
    %c0_i32_1 = arith.constant 0 : i32
    return %c0_i32, %c0_i32_0 : i32, i32
  }
  func.func @transform_8(%arg0: i32) -> (i32, i32) {
    %c0_i32 = arith.constant 0 : i32
    %c0_i32_0 = arith.constant 0 : i32
    %c0_i32_1 = arith.constant 0 : i32
    return %c0_i32, %c0_i32_0 : i32, i32
  }
  func.func @transform_9(%arg0: i32) -> (i32, i32) {
    %c0_i32 = arith.constant 0 : i32
    %c0_i32_0 = arith.constant 0 : i32
    %c0_i32_1 = arith.constant 0 : i32
    return %c0_i32, %c0_i32_0 : i32, i32
  }
  func.func @transform_10(%arg0: i32) -> (i32, i32) {
    %c0_i32 = arith.constant 0 : i32
    %c0_i32_0 = arith.constant 0 : i32
    %c0_i32_1 = arith.constant 0 : i32
    return %c0_i32, %c0_i32_0 : i32, i32
  }
  func.func @transform_11(%arg0: i32) -> (i32, i32) {
    %c0_i32 = arith.constant 0 : i32
    %c0_i32_0 = arith.constant 0 : i32
    %c0_i32_1 = arith.constant 0 : i32
    return %c0_i32, %c0_i32_0 : i32, i32
  }
  func.func @transform_12(%arg0: i32) -> (i32, i32) {
    %c0_i32 = arith.constant 0 : i32
    %c0_i32_0 = arith.constant 0 : i32
    %c0_i32_1 = arith.constant 0 : i32
    return %c0_i32, %c0_i32_0 : i32, i32
  }
  func.func @transform_13(%arg0: i32) -> (i32, i32) {
    %c0_i32 = arith.constant 0 : i32
    %c0_i32_0 = arith.constant 0 : i32
    %c0_i32_1 = arith.constant 0 : i32
    return %c0_i32, %c0_i32_0 : i32, i32
  }
  func.func @transform_14(%arg0: i32) -> (i32, i32, i32) {
    %c0_i32 = arith.constant 0 : i32
    %c0_i32_0 = arith.constant 0 : i32
    %c0_i32_1 = arith.constant 0 : i32
    return %arg0, %c0_i32, %c0_i32_0 : i32, i32, i32
  }
}

</mosaic_0001>

<bundles_post_ra>
// kernel: decoder_layer_forward.1
= control target key start
LH: loop header
LB: loop body
LE: loop exit
PB: predicated region body
PF: predicated region fallthrough
CT: control target
= control target key end

     0   :  { %s2963_s0 = inlined_call_operand.vmem [shape: bf16[2,8,32], index: 0, kind: input, shape index: {}]   ;;  %s2964_s1 = inlined_call_operand.vmem [shape: bf16[2,8,32], index: 1, kind: input, shape index: {}]   ;;  %s2965_s2 = inlined_call_operand.vmem [shape: bf16[2,8,8], index: 2, kind: input, shape index: {}]   ;;  %s2966_s3 = inlined_call_operand.vmem [shape: bf16[2,8,8], index: 3, kind: input, shape index: {}]   ;;  %s2967_s4 = inlined_call_operand.vmem [shape: bf16[32,96], index: 4, kind: input, shape index: {}]   ;;  %s2968_s5 = inlined_call_operand.vmem [shape: f32[1,96], index: 5, kind: input, shape index: {}]   ;;  %s2969_s6 = inlined_call_operand.vmem [shape: bf16[32,32], index: 6, kind: input, shape index: {}]   ;;  %s2970_s7 = inlined_call_operand.vmem [shape: f32[1,32], index: 7, kind: input, shape index: {}]   ;;  %s2971_s8 = inlined_call_operand.vmem [shape: bf16[32,64], index: 8, kind: input, shape index: {}]   ;;  %s2972_s9 = inlined_call_operand.vmem [shape: f32[1,64], index: 9, kind: input, shape index: {}]   ;;  %s2973_s10 = inlined_call_operand.vmem [shape: bf16[64,32], index: 10, kind: input, shape index: {}]   ;;  %s2974_s11 = inlined_call_operand.vmem [shape: f32[1,32], index: 11, kind: input, shape index: {}]   ;;  %s2975_s12 = inlined_call_operand.vmem [shape: f32[1,32], index: 12, kind: input, shape index: {}]   ;;  %s2976_s13 = inlined_call_operand.vmem [shape: f32[1,32], index: 13, kind: input, shape index: {}]   ;;  %s2977_s14 = inlined_call_operand.hbm [shape: f32[2,8,32], index: 14, kind: output, shape index: {}]  }
   0x1   :  { %2992 = sst [smem:[#allocation6_spill]] %s2963_s0 }
   0x2   :  { %2993 = sst [smem:[#allocation7_spill]] %s2964_s1 }
   0x3   :  { %2994 = sst [smem:[#allocation8_spill]] %s2965_s2 }
   0x4   :  { %2995 = sst [smem:[#allocation9_spill]] %s2966_s3 }
   0x5   :  { %19 = vsyncpa [#allocation4], 0 }
   0x6   :  { %21 = vsyncpa [#allocation4 + $0x1], 0  ;;  %s2555_s29 = smov 0   ;;  %s2557_s30 = smov 0  }
   0x7   :  { %s2559_s15 = smov 0   ;;  %s2561_s16 = smov 0  }
   0x8 LB: > { %s2576_s17 = sadd.s32 4294967295, %s2461_s16   ;;  %s2033_s18 = sadd.s32 4294967294, %s2461_s16   ;;  %s2461_s16 = sphi %s2561_s16, %s3019_s16   ;;  %s2457_s15 = sphi %s2559_s15, %s3018_s15   ;;  %s2453_s30 = sphi %s2557_s30, %s3017_s30   ;;  %s2449_s29 = sphi %s2555_s29, %s3016_s29  }
   0x9   : > { %s2580_s19 = sadd.s32 1, %s2461_s16   ;;  %s348_s20 = sadd.s32 1, %s2457_s15 }
   0xa   : > { %s345_s21 = ssub.s32 %s2461_s16, %s2580_s19  ;;  %p358_p0 = scmp.ne.s32.totalorder %s2457_s15, %s2453_s30 }
   0xb   : > { %p346_p1 = scmp.eq.s32.totalorder %s345_s21, 0  ;;  %p359_p2 = scmp.eq.s32.totalorder %s2576_s17, 1 }
   0xc   : > { %p364_p3 = scmp.ne.s32.totalorder %s2453_s30, %s2449_s29  ;;  %p365_p4 = scmp.eq.s32.totalorder %s2033_s18, 1 }
   0xd   : > { %s2591_s22 = scalar_select %p346_p1, %s2457_s15, %s348_s20  }
   0xe   : > { %p2593_p5 = por %p359_p2, %p358_p0  ;;  %p2597_p6 = por %p365_p4, %p364_p3 }
   0xf   : > { %p2036_p7 = scmp.ge.s32.totalorder %s2461_s16, 1  ;;  %p441_p8 = scmp.lt.s32.totalorder %s2461_s16, 3 }
  0x11   : > { %p442_p9 = pnand %p2036_p7, %p441_p8 }
  0x12   : > { %v2606_v0 = vld [vmem:[%s2967_s4] sm:$0xff] (!%p442_p9)   ;;  %v2463_v1 = vmov (!%p442_p9), 0.0   ;;  %v2614_v2 = vld [vmem:[%s2967_s4 + $0x8] sm:$0xff] (!%p442_p9)   ;;  %vm2464_vm0 = vmmov (!%p442_p9), 0   ;;  %p498_p10 = scmp.lt.s32.totalorder (!%p442_p9), %s2576_s17, 1  ;;  %vm552_vm1 = vcmask (!%p442_p9), 261120  }
  0x13   : > { %445 = sbr.rel (%p442_p9) target bundleno = 4374 (0x1116), region = 76  ;;  %2140 = vmatprep.subr.bf16.mxu1 (!%p442_p9), %v2463_v1  ;;  %2154 = vmatprep.subr.bf16.mxu0 (!%p442_p9), %v2463_v1  ;;  %s2998_s0 = sld [smem:[#allocation6_spill]] (!%p442_p9)  ;;  %v2640_v4 = vld [vmem:[%s2968_s5] ss:$0 sm:$0xff] (!%p442_p9)  ;;  %vm600_vm2 = vcmask (!%p442_p9), 64512   ;;  %vm664_vm3 = vcmask (!%p442_p9), 1043456  }
  0x14   : > { %2141 = vmatpush3.bf16.msra.mxu1 (!%p442_p9), %v2606_v0  ;;  %2144 = vmatprep.mubr.msk.bf16.mxu1 (!%p442_p9), %vm2464_vm0, %v2463_v1  ;;  %s2988_s21 = smov (!%p442_p9), 96   ;;  %s2982_s25 = smov (!%p442_p9), 80   ;;  %vm823_vm4 = vcmask (!%p442_p9), 130112   ;;  %vm939_vm5 = vcmask (!%p442_p9), 195712   ;;  %vm1055_vm6 = vcmask (!%p442_p9), 261312   ;;  %vm1863_vm7 = vcmask (!%p442_p9), 523264  }
  0x15   : > { %2142 = vmatprep.subr.bf16.mxu1 (!%p442_p9), %v2463_v1  ;;  %2156 = vmatprep.mubr.msk.bf16.mxu0 (!%p442_p9), %vm2464_vm0, %v2463_v1  ;;  %s2981_s27 = smov (!%p442_p9), 72   ;;  %s2980_s28 = smov (!%p442_p9), 112  }
  0x16   : > { %s2999_s2 = sld [smem:[#allocation8_spill]] (!%p442_p9)  ;;  %s3000_s1 = sld [smem:[#allocation7_spill]] (!%p442_p9) }
  0x17   : > { %s3008_s3 = sld [smem:[#allocation9_spill]] (!%p442_p9) }
  0x18   : > { %2143 = vmatpush3.bf16.msra.mxu1 (!%p442_p9), %v2614_v2 }
  0x19   : > { %2148 = vmatprep.subr.bf16.mxu1 (!%p442_p9), %v2463_v1 }
  0x1a   : > { %s499_s18 = scalar_select %p498_p10, %s2576_s17, 1 }
  0x1c   : > { %s2624_s20 = sshll.u32 %s499_s18, 2  ;;  %s2978_s18 = smov 120  }
  0x1d   : > { %s501_s26 = scalar_lea.vmem %s2998_s0, %s2624_s20  ;;  %s3005_s0 = smov 120  }
  0x1e   : > { %v2631_v3 = vld [vmem:[%s501_s26] sm:$0xf]  ;;  %s2987_s26 = smov 88  }
  0x1f   : > { %2145 = vmatmul.mubr.msk.bf16.vlgmr.msra.gmra.mrb[0].mxu1 %vm552_vm1, %v2631_v3 }
  0x20   : > { %2150 = vmatprep.mubr.msk.bf16.mxu1 %vm2464_vm0, %v2463_v1 }
  0xf2   : > { %v590_v5 = vpop.f32.mrb[0].mxu1 }
  0xf3   : > { %v591_v6 = vadd.f32 %v2640_v4, %v590_v5  ;;  %v2146_v7 = vpop.f32.mrb[1].mxu1 }
  0xf4   : > { %v593_v8 = vpop.f32.mrb[2].mxu1 }
  0xf5   : > { %v2643_v9 = vpack.c.bf16 %v591_v6, %v591_v6  ;;  %v2147_v10 = vpop.f32.mrb[3].mxu1 }
  0xf7   : > { %709 = vrot.lane.b32.xlu1 %v2643_v9, %s2978_s18  ;;  %598 = vrot.lane.b32.xlu0 %v2643_v9, %s2988_s21  ;;  %s2979_s18 = smov 104   ;;  %s2990_s21 = smov 16  }
  0xfb   : > { %827 = vrot.lane.b32.xlu1 %v2643_v9, %s2982_s25  ;;  %711 = vrot.lane.b32.xlu0 %v2643_v9, %s2987_s26  ;;  %s2983_s25 = smov 48   ;;  %s3003_s26 = smov 80  }
  0xff   : > { %943 = vrot.lane.b32.xlu1 %v2643_v9, %s2981_s27  ;;  %825 = vrot.lane.b32.xlu0 %v2643_v9, %s2980_s28  ;;  %s509_s27 = scalar_lea.vmem %s2999_s2, %s2624_s20  ;;  %s2984_s28 = smov 40  }
 0x100   : > { %v517_v22 = vld [vmem:[%s509_s27] sm:$0xf]  ;;  %s2985_s27 = smov 64  }
 0x101   : > { %v518_v23 = vunpack.c.l.bf16 %v517_v22 }
 0x103   : > { %941 = vrot.lane.b32.xlu0 %v2643_v9, %s2979_s18  ;;  %s2986_s18 = smov 56  }
 0x169   : > { %v599_v11 = vpop.permute.xlu0 %598  ;;  %v710_v14 = vpop.permute.xlu1 %709 }
 0x16a   : > { %v605_v12 = vsel %vm600_vm2, %v599_v11, 0 }
 0x16b   : > { %2149 = vmatpush3.bf16.xpose.msra.mxu1 %v605_v12 }
 0x16c   : > { %2160 = vmatprep.subr.bf16.mxu1 %v2463_v1 }
 0x16d   : > { %v712_v13 = vpop.permute.xlu0 %711  ;;  %v828_v16 = vpop.permute.xlu1 %827 }
 0x16e   : > { %v717_v15 = vsel %vm600_vm2, %v712_v13, 0  ;;  %v833_v17 = vsel %vm600_vm2, %v828_v16, 0 }
 0x171   : > { %v944_v18 = vpop.permute.xlu1 %943  ;;  %v826_v19 = vpop.permute.xlu0 %825 }
 0x172   : > { %2151 = vmatmul.mubr.msk.bf16.vlgmr.msra.gmra.mrb[4].mxu1 %vm600_vm2, %v2643_v9  ;;  %v949_v20 = vsel %vm600_vm2, %v944_v18, 0 }
 0x173   : > { %2161 = vmatpush3.bf16.xpose.msra.mxu1 %v717_v15  ;;  %2162 = vmatprep.mubr.msk.bf16.mxu1 %vm2464_vm0, %v2463_v1 }
 0x174   : > { %2172 = vmatprep.subr.bf16.mxu1 %v2463_v1 }
 0x175   : > { %v942_v21 = vpop.permute.xlu0 %941 }
 0x17a   : > { %2163 = vmatmul.mubr.msk.bf16.vlgmr.msra.gmra.mrb[8].mxu1 %vm600_vm2, %v710_v14 }
 0x17b   : > { %2173 = vmatpush3.bf16.xpose.msra.mxu1 %v833_v17  ;;  %2174 = vmatprep.mubr.msk.bf16.mxu1 %vm2464_vm0, %v2463_v1 }
 0x17c   : > { %2184 = vmatprep.subr.bf16.mxu1 %v2463_v1 }
 0x182   : > { %2175 = vmatmul.mubr.msk.bf16.vlgmr.msra.gmra.mrb[12].mxu1 %vm600_vm2, %v826_v19 }
 0x183   : > { %2185 = vmatpush3.bf16.xpose.msra.mxu1 %v949_v20  ;;  %2186 = vmatprep.mubr.msk.bf16.mxu1 %vm2464_vm0, %v2463_v1 }
 0x184   : > { %2196 = vmatprep.subr.bf16.mxu1 %v2463_v1 }
 0x18a   : > { %2187 = vmatmul.mubr.msk.bf16.vlgmr.msra.gmra.mrb[16].mxu1 %vm600_vm2, %v942_v21 }
 0x18b   : > { %2200 = vmatprep.mubr.msk.bf16.mxu1 %vm2464_vm0, %v2463_v1 }
 0x245   : > { %v641_v24 = vpop.f32.mrb[4].mxu1 }
 0x246   : > { %v642_v25 = vadd.f32 %v641_v24, %v518_v23  ;;  %v2152_v26 = vpop.f32.mrb[5].mxu1 }
 0x247   : > { %v644_v27 = vpop.f32.mrb[6].mxu1 }
 0x248   : > { %v2153_v28 = vpop.f32.mrb[7].mxu1  ;;  %v647_v29 = vsel %vm600_vm2, %v642_v25, -inf }
 0x249   : > { %648 = vmax.xlane.f32.xlu1 %v647_v29 }
 0x24d   : > { %v753_v30 = vpop.f32.mrb[8].mxu1 }
 0x24e   : > { %v754_v31 = vadd.f32 %v753_v30, %v518_v23  ;;  %v2164_v32 = vpop.f32.mrb[9].mxu1 }
 0x24f   : > { %v756_v33 = vpop.f32.mrb[10].mxu1 }
 0x250   : > { %v2165_v34 = vpop.f32.mrb[11].mxu1  ;;  %v759_v35 = vsel %vm600_vm2, %v754_v31, -inf }
 0x251   : > { %760 = vmax.xlane.f32.xlu0 %v759_v35 }
 0x255   : > { %v869_v36 = vpop.f32.mrb[12].mxu1 }
 0x256   : > { %v870_v37 = vadd.f32 %v869_v36, %v518_v23  ;;  %v2176_v38 = vpop.f32.mrb[13].mxu1 }
 0x257   : > { %v872_v39 = vpop.f32.mrb[14].mxu1 }
 0x258   : > { %v2177_v40 = vpop.f32.mrb[15].mxu1  ;;  %v875_v41 = vsel %vm600_vm2, %v870_v37, -inf }
 0x259   : > { %876 = vmax.xlane.f32.xlu0 %v875_v41  ;;  %v2729_v41 = vld [vmem:[%s2969_s6] sm:$0xff]  }
 0x25a   : > { %2197 = vmatpush3.bf16.msra.mxu1 %v2729_v41 }
 0x25b   : > { %2198 = vmatprep.subr.bf16.mxu1 %v2463_v1 }
 0x25d   : > { %v985_v42 = vpop.f32.mrb[16].mxu1 }
 0x25e   : > { %v986_v43 = vadd.f32 %v985_v42, %v518_v23  ;;  %v2188_v44 = vpop.f32.mrb[17].mxu1  ;;  %v2735_v42 = vld [vmem:[%s2969_s6 + $0x8] sm:$0xff]  }
 0x25f   : > { %v988_v45 = vpop.f32.mrb[18].mxu1  ;;  %2199 = vmatpush3.bf16.msra.mxu1 %v2735_v42 }
 0x260   : > { %v2189_v46 = vpop.f32.mrb[19].mxu1  ;;  %v991_v47 = vsel %vm600_vm2, %v986_v43, -inf  ;;  %2212 = vmatprep.subr.bf16.mxu1 %v2463_v1 }
 0x261   : > { %992 = vmax.xlane.f32.xlu1 %v991_v47 }
 0x2d6   : > { %v649_v48 = vpop.xlane.xlu1 %648 }
 0x2d7   : > { %v650_v49 = vsub.f32 %v642_v25, %v649_v48 }
 0x2d9   : > { %v651_v50 = vmul.f32 1.442695, %v650_v49 }
 0x2db   : > { %2361 = vpow2.f32 %v651_v50 }
 0x2de   : > { %v761_v51 = vpop.xlane.xlu0 %760 }
 0x2df   : > { %v762_v52 = vsub.f32 %v754_v31, %v761_v51 }
 0x2e1   : > { %v763_v53 = vmul.f32 1.442695, %v762_v52 }
 0x2e3   : > { %2363 = vpow2.f32 %v763_v53 }
 0x2e5   : > { %v2362_v54 = vpop.eup %2361 }
 0x2e6   : > { %v877_v55 = vpop.xlane.xlu0 %876  ;;  %v653_v56 = vsel %vm600_vm2, %v2362_v54, 0.0 }
 0x2e7   : > { %v878_v57 = vsub.f32 %v870_v37, %v877_v55  ;;  %654 = vadd.xlane.f32.xlu0 %v653_v56  ;;  %v2755_v56 = vld [vmem:[%s2970_s7] ss:$0 sm:$0xff] }
 0x2e9   : > { %v879_v58 = vmul.f32 1.442695, %v878_v57  ;;  %v533_v57 = vunpack.c.l.bf16 %v2631_v3 }
 0x2eb   : > { %2365 = vpow2.f32 %v879_v58 }
 0x2ed   : > { %v2364_v59 = vpop.eup %2363 }
 0x2ee   : > { %v765_v60 = vsel %vm600_vm2, %v2364_v59, 0.0  ;;  %v993_v63 = vpop.xlane.xlu1 %992 }
 0x2ef   : > { %766 = vadd.xlane.f32.xlu1 %v765_v60  ;;  %v994_v5 = vsub.f32 %v986_v43, %v993_v63 }
 0x2f1   : > { %v995_v6 = vmul.f32 1.442695, %v994_v5 }
 0x2f3   : > { %2367 = vpow2.f32 %v995_v6 }
 0x2f5   : > { %v2366_v61 = vpop.eup %2365 }
 0x2f6   : > { %v881_v62 = vsel %vm600_vm2, %v2366_v61, 0.0 }
 0x2f7   : > { %882 = vadd.xlane.f32.xlu0 %v881_v62 }
 0x2fd   : > { %v2368_v7 = vpop.eup %2367 }
 0x2fe   : > { %v997_v8 = vsel %vm600_vm2, %v2368_v7, 0.0 }
 0x300   : > { %771 = vrot.lane.b32.xlu1 %v2643_v9, %s2986_s18  ;;  %s3004_s18 = smov 72  }
 0x30d   : > { %659 = vrot.lane.b32.xlu0 %v2643_v9, %s2985_s27  ;;  %s2989_s27 = smov 24  }
 0x311   : > { %1003 = vrot.lane.b32.xlu0 %v2643_v9, %s2984_s28  ;;  %s513_s28 = scalar_lea.vmem %s3008_s3, %s2624_s20 }
 0x324   : > { %998 = vadd.xlane.f32.xlu1 %v997_v8 }
 0x335   : > { %887 = vrot.lane.b32.xlu1 %v2643_v9, %s2983_s25  ;;  %s2991_s25 = smov 8  }
 0x374   : > { %v655_v10 = vpop.xlane.xlu0 %654 }
 0x375   : > { %2369 = vrcp.f32 %v655_v10 }
 0x37c   : > { %v767_v11 = vpop.xlane.xlu1 %766 }
 0x37d   : > { %2371 = vrcp.f32 %v767_v11 }
 0x37f   : > { %v2370_v12 = vpop.eup %2369 }
 0x380   : > { %v657_v14 = vmul.f32 %v2370_v12, %v2362_v54  ;;  %v772_v17 = vpop.permute.xlu1 %771 }
 0x381   : > { %v777_v20 = vsel %vm664_vm3, %v772_v17, 0 }
 0x382   : > { %v658_v18 = vpack.c.bf16 %v657_v14, %v657_v14 }
 0x384   : > { %v883_v13 = vpop.xlane.xlu0 %882 }
 0x385   : > { %2373 = vrcp.f32 %v883_v13 }
 0x387   : > { %v2372_v19 = vpop.eup %2371 }
 0x388   : > { %v660_v15 = vpop.permute.xlu0 %659  ;;  %v769_v9 = vmul.f32 %v2372_v19, %v2364_v59 }
 0x389   : > { %v666_v16 = vsel %vm664_vm3, %v660_v15, 0 }
 0x38a   : > { %2155 = vmatpush3.bf16.msra.mxu0 %v666_v16  ;;  %v770_v21 = vpack.c.bf16 %v769_v9, %v769_v9 }
 0x38b   : > { %2166 = vmatprep.subr.bf16.mxu0 %v2463_v1 }
 0x38c   : > { %v1004_v27 = vpop.permute.xlu0 %1003 }
 0x38d   : > { %2157 = vmatmul.mubr.msk.bf16.vlgmr.msra.gmra.mrb[0].mxu0 %vm600_vm2, %v658_v18  ;;  %v1009_v29 = vsel %vm664_vm3, %v1004_v27, 0 }
 0x38e   : > { %2167 = vmatpush3.bf16.msra.mxu0 %v777_v20  ;;  %2168 = vmatprep.mubr.msk.bf16.mxu0 %vm2464_vm0, %v2463_v1  ;;  %v2782_v20 = vld [vmem:[%s2975_s12] ss:$0 sm:$0xff] }
 0x38f   : > { %2178 = vmatprep.subr.bf16.mxu0 %v2463_v1  ;;  %v2374_v22 = vpop.eup %2373 }
 0x390   : > { %v885_v24 = vmul.f32 %v2374_v22, %v2366_v61 }
 0x392   : > { %v886_v28 = vpack.c.bf16 %v885_v24, %v885_v24 }
 0x395   : > { %2169 = vmatmul.mubr.msk.bf16.vlgmr.msra.gmra.mrb[4].mxu0 %vm600_vm2, %v770_v21  ;;  %v2787_v21 = vld [vmem:[%s2976_s13] ss:$0 sm:$0xff] }
 0x396   : > { %2180 = vmatprep.mubr.msk.bf16.mxu0 %vm2464_vm0, %v2463_v1 }
 0x3b1   : > { %v999_v23 = vpop.xlane.xlu1 %998 }
 0x3b2   : > { %2375 = vrcp.f32 %v999_v23 }
 0x3b5   : > { %v888_v25 = vpop.permute.xlu1 %887 }
 0x3b6   : > { %v893_v26 = vsel %vm664_vm3, %v888_v25, 0 }
 0x3b7   : > { %2179 = vmatpush3.bf16.msra.mxu0 %v893_v26 }
 0x3b8   : > { %2190 = vmatprep.subr.bf16.mxu0 %v2463_v1 }
 0x3ba   : > { %2181 = vmatmul.mubr.msk.bf16.vlgmr.msra.gmra.mrb[8].mxu0 %vm600_vm2, %v886_v28 }
 0x3bb   : > { %2191 = vmatpush3.bf16.msra.mxu0 %v1009_v29  ;;  %2192 = vmatprep.mubr.msk.bf16.mxu0 %vm2464_vm0, %v2463_v1 }
 0x3bc   : > { %v2376_v30 = vpop.eup %2375  ;;  %2204 = vmatprep.subr.bf16.mxu0 %v2463_v1 }
 0x3bd   : > { %v1001_v31 = vmul.f32 %v2376_v30, %v2368_v7 }
 0x3bf   : > { %v1002_v32 = vpack.c.bf16 %v1001_v31, %v1001_v31 }
 0x3c2   : > { %2193 = vmatmul.mubr.msk.bf16.vlgmr.msra.gmra.mrb[12].mxu0 %vm600_vm2, %v1002_v32 }
 0x3c3   : > { %2205 = vmatpush3.bf16.msra.mxu0 %v2606_v0  ;;  %2208 = vmatprep.mubr.msk.bf16.mxu0 %vm2464_vm0, %v2463_v1 }
 0x3c4   : > { %2206 = vmatprep.subr.bf16.mxu0 %v2463_v1 }
 0x3c7   : > { %2207 = vmatpush3.bf16.msra.mxu0 %v2614_v2 }
 0x3c8   : > { %2220 = vmatprep.subr.bf16.mxu0 %v2463_v1 }
 0x460   : > { %v702_v33 = vpop.f32.mrb[0].mxu0 }
 0x461   : > { %708 = vst.msk [vmem:[#allocation2] sm:$0xff] %vm600_vm2, %v702_v33  ;;  %v2158_v34 = vpop.f32.mrb[1].mxu0 }
 0x462   : > { %v705_v35 = vpop.f32.mrb[2].mxu0 }
 0x463   : > { %v2159_v36 = vpop.f32.mrb[3].mxu0 }
 0x468   : > { %v813_v37 = vpop.f32.mrb[4].mxu0 }
 0x469   : > { %820 = vrot.lane.b32.xlu1 %v813_v37, %s2991_s25  ;;  %v2170_v38 = vpop.f32.mrb[5].mxu0  ;;  %s3006_s25 = smov 112  }
 0x46a   : > { %v816_v39 = vpop.f32.mrb[6].mxu0 }
 0x46b   : > { %v2171_v40 = vpop.f32.mrb[7].mxu0 }
 0x48d   : > { %v929_v43 = vpop.f32.mrb[8].mxu0 }
 0x48e   : > { %936 = vrot.lane.b32.xlu0 %v929_v43, %s2990_s21  ;;  %v2182_v44 = vpop.f32.mrb[9].mxu0  ;;  %s505_s21 = scalar_lea.vmem %s3000_s1, %s2624_s20  ;;  %v519_v43 = vld [vmem:[%s513_s28] sm:$0xf]  ;;  %s3009_s20 = smov 56  }
 0x48f   : > { %v932_v45 = vpop.f32.mrb[10].mxu0  ;;  %v520_v44 = vunpack.c.l.bf16 %v519_v43  ;;  %s495_s28 = sand.u32 1, %s2453_s30  }
 0x490   : > { %v2183_v46 = vpop.f32.mrb[11].mxu0  ;;  %s1925_s1 = scalar_lea.sflag [#allocation4], %s495_s28 }
 0x495   : > { %v1045_v47 = vpop.f32.mrb[12].mxu0 }
 0x496   : > { %1052 = vrot.lane.b32.xlu1 %v1045_v47, %s2989_s27  ;;  %v2194_v48 = vpop.f32.mrb[13].mxu0  ;;  %s3002_s27 = smov 88  }
 0x497   : > { %v1048_v49 = vpop.f32.mrb[14].mxu0 }
 0x498   : > { %v2195_v50 = vpop.f32.mrb[15].mxu0 }
 0x4db   : > { %v821_v51 = vpop.permute.xlu1 %820 }
 0x4dc   : > { %824 = vst.msk [vmem:[#allocation2] sm:$0xff] %vm823_vm4, %v821_v51 }
 0x500   : > { %v937_v52 = vpop.permute.xlu0 %936 }
 0x501   : > { %940 = vst.msk [vmem:[#allocation2] sm:$0xff] %vm939_vm5, %v937_v52 }
 0x508   : > { %v1053_v53 = vpop.permute.xlu1 %1052 }
 0x509   : > { %1056 = vst.msk [vmem:[#allocation2] sm:$0xff] %vm1055_vm6, %v1053_v53 }
 0x510   : > { %v1057_v54 = vld [vmem:[#allocation2] sm:$0xff] }
 0x511   : > { %v1058_v55 = vpack.c.bf16 %v1057_v54, %v1057_v54 }
 0x513   : > { %2201 = vmatmul.mubr.msk.bf16.vlgmr.msra.gmra.mrb[20].mxu1 %vm552_vm1, %v1058_v55 }
 0x514   : > { %2213 = vmatpush3.bf16.msra.mxu1 %v2606_v0  ;;  %2216 = vmatprep.mubr.msk.bf16.mxu1 %vm2464_vm0, %v2463_v1 }
 0x515   : > { %2214 = vmatprep.subr.bf16.mxu1 %v2463_v1 }
 0x518   : > { %2215 = vmatpush3.bf16.msra.mxu1 %v2614_v2  ;;  %v516_v2 = vld [vmem:[%s505_s21] sm:$0xf]  ;;  %s3001_s21 = smov 96  }
 0x519   : > { %2226 = vmatprep.subr.bf16.mxu1 %v2463_v1 }
 0x51b   : > { %2217 = vmatmul.mubr.msk.bf16.vlgmr.msra.gmra.mrb[24].mxu1 %vm552_vm1, %v516_v2 }
 0x51c   : > { %2228 = vmatprep.mubr.msk.bf16.mxu1 %vm2464_vm0, %v2463_v1 }
 0x5e6   : > { %v1114_v58 = vpop.f32.mrb[20].mxu1 }
 0x5e7   : > { %v1115_v59 = vadd.f32 %v2755_v56, %v1114_v58  ;;  %v2202_v0 = vpop.f32.mrb[21].mxu1 }
 0x5e8   : > { %v1117_v60 = vpop.f32.mrb[22].mxu1 }
 0x5e9   : > { %v2203_v61 = vpop.f32.mrb[23].mxu1  ;;  %v1120_v62 = vadd.f32 %v1115_v59, %v533_v57 }
 0x5eb   : > { %v1121_v63 = vsel %vm552_vm1, %v1120_v62, 0.0 }
 0x5ec   : > { %1122 = vadd.xlane.f32.xlu0 %v1121_v63 }
 0x5ee   : > { %v1231_v10 = vpop.f32.mrb[24].mxu1 }
 0x5ef   : > { %v1232_v11 = vadd.f32 %v2640_v4, %v1231_v10  ;;  %v2218_v12 = vpop.f32.mrb[25].mxu1 }
 0x5f0   : > { %v1234_v13 = vpop.f32.mrb[26].mxu1 }
 0x5f1   : > { %v2769_v14 = vpack.c.bf16 %v1232_v11, %v1232_v11  ;;  %v2219_v15 = vpop.f32.mrb[27].mxu1 }
 0x602   : > { %1239 = vrot.lane.b32.xlu0 %v2769_v14, %s3001_s21  ;;  %s3010_s21 = smov 64  }
 0x679   : > { %v1123_v3 = vpop.xlane.xlu0 %1122 }
 0x67a   : > { %v1125_v5 = vmul.f32 0.03125, %v1123_v3 }
 0x67c   : > { %v1126_v6 = vsub.f32 %v1120_v62, %v1125_v5 }
 0x67d   : > { %v1240_v25 = vpop.permute.xlu0 %1239 }
 0x67e   : > { %v1127_v7 = vmul.f32 %v1126_v6, %v1126_v6  ;;  %v1245_v26 = vsel %vm600_vm2, %v1240_v25, 0 }
 0x680   : > { %v1128_v8 = vsel %vm552_vm1, %v1127_v7, 0.0 }
 0x681   : > { %1129 = vadd.xlane.f32.xlu1 %v1128_v8 }
 0x692   : > { %1351 = vrot.lane.b32.xlu1 %v2769_v14, %s3002_s27  ;;  %s3007_s27 = smov 104  }
 0x696   : > { %1466 = vrot.lane.b32.xlu1 %v2769_v14, %s3003_s26  ;;  %s3014_s26 = smov 16  }
 0x69a   : > { %1581 = vrot.lane.b32.xlu1 %v2769_v14, %s3004_s18  ;;  %s3015_s18 = smov 24  }
 0x70e   : > { %v1130_v16 = vpop.xlane.xlu1 %1129 }
 0x70f   : > { %v1131_v17 = vmul.f32 0.03125, %v1130_v16 }
 0x711   : > { %v1132_v18 = vadd.f32 1e-05, %v1131_v17 }
 0x712   : > { %v1352_v31 = vpop.permute.xlu1 %1351 }
 0x713   : > { %2377 = vrsqrt.f32 %v1132_v18  ;;  %v1357_v34 = vsel %vm600_vm2, %v1352_v31, 0 }
 0x71d   : > { %v2378_v19 = vpop.eup %2377 }
 0x71e   : > { %v1134_v9 = vmul.f32 %v2378_v19, %v1126_v6 }
 0x720   : > { %v1141_v22 = vmul.f32 %v2782_v20, %v1134_v9 }
 0x722   : > { %v2791_v23 = vadd.f32 %v2787_v21, %v1141_v22 }
 0x724   : > { %v1149_v24 = vpack.c.bf16 %v2791_v23, %v2791_v23 }
 0x726   : > { %2209 = vmatmul.mubr.msk.bf16.vlgmr.msra.gmra.mrb[16].mxu0 %vm552_vm1, %v1149_v24 }
 0x727   : > { %2222 = vmatprep.mubr.msk.bf16.mxu0 %vm2464_vm0, %v2463_v1  ;;  %2221 = vmatpush3.bf16.xpose.msra.mxu0 %v1245_v26 }
 0x728   : > { %2232 = vmatprep.subr.bf16.mxu0 %v2463_v1 }
 0x7f9   : > { %v1187_v27 = vpop.f32.mrb[16].mxu0 }
 0x7fa   : > { %v1188_v28 = vadd.f32 %v2640_v4, %v1187_v27  ;;  %v2210_v29 = vpop.f32.mrb[17].mxu0  ;;  %v1467_v4 = vpop.permute.xlu1 %1466 }
 0x7fb   : > { %v1190_v30 = vpop.f32.mrb[18].mxu0  ;;  %v1472_v36 = vsel %vm600_vm2, %v1467_v4, 0 }
 0x7fc   : > { %v1193_v32 = vpack.c.bf16 %v1188_v28, %v1188_v28  ;;  %v2211_v33 = vpop.f32.mrb[19].mxu0 }
 0x7fe   : > { %1349 = vrot.lane.b32.xlu0 %v1193_v32, %s3005_s0  ;;  %2223 = vmatmul.mubr.msk.bf16.vlgmr.msra.gmra.mrb[20].mxu0 %vm600_vm2, %v1193_v32  ;;  %v1582_v37 = vpop.permute.xlu1 %1581  ;;  %s3011_s0 = smov 40  }
 0x7ff   : > { %2233 = vmatpush3.bf16.xpose.msra.mxu0 %v1357_v34  ;;  %2234 = vmatprep.mubr.msk.bf16.mxu0 %vm2464_vm0, %v2463_v1  ;;  %v1587_v39 = vsel %vm600_vm2, %v1582_v37, 0 }
 0x800   : > { %2244 = vmatprep.subr.bf16.mxu0 %v2463_v1 }
 0x802   : > { %1464 = vrot.lane.b32.xlu0 %v1193_v32, %s3006_s25  ;;  %s3012_s25 = smov 48  }
 0x806   : > { %1579 = vrot.lane.b32.xlu0 %v1193_v32, %s3007_s27  ;;  %s3013_s27 = smov 8  }
 0x870   : > { %v1350_v35 = vpop.permute.xlu0 %1349 }
 0x871   : > { %2235 = vmatmul.mubr.msk.bf16.vlgmr.msra.gmra.mrb[24].mxu0 %vm600_vm2, %v1350_v35 }
 0x872   : > { %2245 = vmatpush3.bf16.xpose.msra.mxu0 %v1472_v36  ;;  %2246 = vmatprep.mubr.msk.bf16.mxu0 %vm2464_vm0, %v2463_v1 }
 0x873   : > { %2256 = vmatprep.subr.bf16.mxu0 %v2463_v1 }
 0x874   : > { %v1465_v38 = vpop.permute.xlu0 %1464 }
 0x878   : > { %v1580_v40 = vpop.permute.xlu0 %1579 }
 0x879   : > { %2247 = vmatmul.mubr.msk.bf16.vlgmr.msra.gmra.mrb[28].mxu0 %vm600_vm2, %v1465_v38 }
 0x87a   : > { %2257 = vmatpush3.bf16.xpose.msra.mxu0 %v1587_v39  ;;  %2258 = vmatprep.mubr.msk.bf16.mxu0 %vm2464_vm0, %v2463_v1 }
 0x87b   : > { %2268 = vmatprep.subr.bf16.mxu0 %v2463_v1 }
 0x881   : > { %2259 = vmatmul.mubr.msk.bf16.vlgmr.msra.gmra.mrb[32].mxu0 %vm600_vm2, %v1580_v40 }
 0x882   : > { %2269 = vmatpush3.bf16.msra.mxu0 %v2729_v41  ;;  %2272 = vmatprep.mubr.msk.bf16.mxu0 %vm2464_vm0, %v2463_v1 }
 0x883   : > { %2270 = vmatprep.subr.bf16.mxu0 %v2463_v1 }
 0x886   : > { %2271 = vmatpush3.bf16.msra.mxu0 %v2735_v42 }
 0x887   : > { %2284 = vmatprep.subr.bf16.mxu0 %v2463_v1 }
 0x8d1   : > { %v1281_v45 = vpop.f32.mrb[20].mxu0 }
 0x8d2   : > { %v1282_v46 = vadd.f32 %v1281_v45, %v520_v44  ;;  %v2224_v47 = vpop.f32.mrb[21].mxu0 }
 0x8d3   : > { %v1284_v48 = vpop.f32.mrb[22].mxu0 }
 0x8d4   : > { %v2225_v41 = vpop.f32.mrb[23].mxu0  ;;  %v1287_v49 = vsel %vm600_vm2, %v1282_v46, -inf }
 0x8d5   : > { %1288 = vmax.xlane.f32.xlu1 %v1287_v49 }
 0x944   : > { %v1393_v50 = vpop.f32.mrb[24].mxu0 }
 0x945   : > { %v1394_v51 = vadd.f32 %v1393_v50, %v520_v44  ;;  %v2236_v52 = vpop.f32.mrb[25].mxu0 }
 0x946   : > { %v1396_v42 = vpop.f32.mrb[26].mxu0 }
 0x947   : > { %v2237_v53 = vpop.f32.mrb[27].mxu0  ;;  %v1399_v54 = vsel %vm600_vm2, %v1394_v51, -inf }
 0x948   : > { %1400 = vmax.xlane.f32.xlu0 %v1399_v54 }
 0x94c   : > { %v1508_v55 = vpop.f32.mrb[28].mxu0 }
 0x94d   : > { %v1509_v57 = vadd.f32 %v1508_v55, %v520_v44  ;;  %v2248_v58 = vpop.f32.mrb[29].mxu0 }
 0x94e   : > { %v1511_v59 = vpop.f32.mrb[30].mxu0 }
 0x94f   : > { %v2249_v0 = vpop.f32.mrb[31].mxu0  ;;  %v1514_v60 = vsel %vm600_vm2, %v1509_v57, -inf }
 0x950   : > { %1515 = vmax.xlane.f32.xlu0 %v1514_v60 }
 0x954   : > { %v1623_v61 = vpop.f32.mrb[32].mxu0 }
 0x955   : > { %v1624_v62 = vadd.f32 %v1623_v61, %v520_v44  ;;  %v2260_v63 = vpop.f32.mrb[33].mxu0 }
 0x956   : > { %v1626_v2 = vpop.f32.mrb[34].mxu0 }
 0x957   : > { %v2261_v3 = vpop.f32.mrb[35].mxu0  ;;  %v1629_v5 = vsel %vm600_vm2, %v1624_v62, -inf }
 0x958   : > { %1630 = vmax.xlane.f32.xlu1 %v1629_v5 }
 0x962   : > { %v1289_v6 = vpop.xlane.xlu1 %1288 }
 0x963   : > { %v1290_v7 = vsub.f32 %v1282_v46, %v1289_v6 }
 0x965   : > { %v1291_v8 = vmul.f32 1.442695, %v1290_v7 }
 0x967   : > { %2379 = vpow2.f32 %v1291_v8 }
 0x971   : > { %v2380_v10 = vpop.eup %2379 }
 0x972   : > { %v1293_v11 = vsel %vm600_vm2, %v2380_v10, 0.0 }
 0x973   : > { %1294 = vadd.xlane.f32.xlu0 %v1293_v11 }
 0x9d5   : > { %v1401_v12 = vpop.xlane.xlu0 %1400 }
 0x9d6   : > { %v1402_v13 = vsub.f32 %v1394_v51, %v1401_v12 }
 0x9d8   : > { %v1403_v15 = vmul.f32 1.442695, %v1402_v13 }
 0x9da   : > { %2381 = vpow2.f32 %v1403_v15 }
 0x9dd   : > { %v1516_v16 = vpop.xlane.xlu0 %1515 }
 0x9de   : > { %v1517_v17 = vsub.f32 %v1509_v57, %v1516_v16 }
 0x9e0   : > { %v1518_v18 = vmul.f32 1.442695, %v1517_v17 }
 0x9e2   : > { %2383 = vpow2.f32 %v1518_v18 }
 0x9e4   : > { %v2382_v19 = vpop.eup %2381 }
 0x9e5   : > { %v1405_v9 = vsel %vm600_vm2, %v2382_v19, 0.0  ;;  %v1631_v25 = vpop.xlane.xlu1 %1630 }
 0x9e6   : > { %1406 = vadd.xlane.f32.xlu1 %v1405_v9  ;;  %v1632_v26 = vsub.f32 %v1624_v62, %v1631_v25 }
 0x9e8   : > { %v1633_v27 = vmul.f32 1.442695, %v1632_v26 }
 0x9ea   : > { %2385 = vpow2.f32 %v1633_v27 }
 0x9ec   : > { %v2384_v22 = vpop.eup %2383 }
 0x9ed   : > { %v1520_v24 = vsel %vm600_vm2, %v2384_v22, 0.0 }
 0x9ee   : > { %1521 = vadd.xlane.f32.xlu0 %v1520_v24 }
 0x9f4   : > { %v2386_v28 = vpop.eup %2385 }
 0x9f5   : > { %v1635_v29 = vsel %vm600_vm2, %v2386_v28, 0.0 }
 0x9f7   : > { %1411 = vrot.lane.b32.xlu1 %v2769_v14, %s3009_s20  ;;  %s2037_s20 = sshll.u32 %s495_s28, 3 }
 0xa00   : > { %v1295_v30 = vpop.xlane.xlu0 %1294 }
 0xa01   : > { %2387 = vrcp.f32 %v1295_v30 }
 0xa04   : > { %1299 = vrot.lane.b32.xlu0 %v2769_v14, %s3010_s21  ;;  %s2082_s21 = sshll.u32 %s2576_s17, 7 }
 0xa08   : > { %1641 = vrot.lane.b32.xlu0 %v2769_v14, %s3011_s0  ;;  %s497_s0 = scalar_lea.vmem [#allocation3], %s2037_s20  ;;  %s2479_s20 = smov [#allocation3]  }
 0xa09   : > { %s2403_s2 = sshll.u32 %s2479_s20, 4  ;;  %s2404_s2 = int_to_ptr.vmem [resolvable:$false] %s2403_s2 }
 0xa0a   : > { %s2405_s3 = scalar_lea.vmem %s2404_s2, 256 }
 0xa0b   : > { %v2388_v32 = vpop.eup %2387 }
 0xa0c   : > { %v1297_v34 = vmul.f32 %v2388_v32, %v2380_v10 }
 0xa0e   : > { %v1298_v37 = vpack.c.bf16 %v1297_v34, %v1297_v34 }
 0xa1b   : > { %1636 = vadd.xlane.f32.xlu1 %v1635_v29  ;;  %v2358_v29 = vld [vmem:[%s2973_s10 + $0x8] sm:$0xff]  }
 0xa2c   : > { %1526 = vrot.lane.b32.xlu1 %v2769_v14, %s3012_s25  ;;  %s1938_s25 = sshll.u32 %s497_s0, 4  ;;  %s2922_s25 = int_to_ptr.vmem [resolvable:$true] %s1938_s25 }
 0xa2d   : > { %s2399_s17 = scalar_lea.vmem %s2922_s25, 128  ;;  %p2406_p0 = scmp.lt.s32.totalorder %s2922_s25, %s2404_s2 }
 0xa2e   : > { %p2400_p11 = scmp.ne.s32.totalorder %s2922_s25, %s2399_s17  ;;  %p2407_p1 = scmp.lt.s32.totalorder %s2405_s3, %s2399_s17 }
 0xa30   : > { %p2401_p12 = pnand %p2400_p11, %p2593_p5  ;;  %p2408_p2 = por %p2407_p1, %p2406_p0 }
 0xa32   : > { %p2402_p13 = pneg %p2401_p12 }
 0xa34   : > { %p2409_p3 = pnand %p2408_p2, %p2402_p13 }
 0xa73   : > { %v1407_v31 = vpop.xlane.xlu1 %1406 }
 0xa74   : > { %2389 = vrcp.f32 %v1407_v31 }
 0xa77   : > { %v1412_v36 = vpop.permute.xlu1 %1411 }
 0xa78   : > { %v1417_v39 = vsel %vm664_vm3, %v1412_v36, 0 }
 0xa7b   : > { %v1522_v33 = vpop.xlane.xlu0 %1521 }
 0xa7c   : > { %2391 = vrcp.f32 %v1522_v33 }
 0xa7e   : > { %v2390_v38 = vpop.eup %2389 }
 0xa7f   : > { %v1300_v4 = vpop.permute.xlu0 %1299  ;;  %v1409_v14 = vmul.f32 %v2390_v38, %v2382_v19  ;;  %v2360_v38 = vld [vmem:[%s2973_s10 + $0x18] sm:$0xff]  }
 0xa80   : > { %v1305_v35 = vsel %vm664_vm3, %v1300_v4, 0 }
 0xa81   : > { %2227 = vmatpush3.bf16.msra.mxu1 %v1305_v35  ;;  %v1410_v40 = vpack.c.bf16 %v1409_v14, %v1409_v14 }
 0xa82   : > { %2238 = vmatprep.subr.bf16.mxu1 %v2463_v1 }
 0xa83   : > { %v1642_v48 = vpop.permute.xlu0 %1641 }
 0xa84   : > { %2229 = vmatmul.mubr.msk.bf16.vlgmr.msra.gmra.mrb[28].mxu1 %vm600_vm2, %v1298_v37  ;;  %v1647_v49 = vsel %vm664_vm3, %v1642_v48, 0  ;;  %v2359_v37 = vld [vmem:[%s2973_s10 + $0x10] sm:$0xff]  }
 0xa85   : > { %2239 = vmatpush3.bf16.msra.mxu1 %v1417_v39  ;;  %2240 = vmatprep.mubr.msk.bf16.mxu1 %vm2464_vm0, %v2463_v1  ;;  %v2071_v39 = vld [vmem:[%s2972_s9] ss:$0 sm:$0xff] }
 0xa86   : > { %2250 = vmatprep.subr.bf16.mxu1 %v2463_v1  ;;  %v2392_v43 = vpop.eup %2391 }
 0xa87   : > { %v1524_v45 = vmul.f32 %v2392_v43, %v2384_v22 }
 0xa89   : > { %v1525_v41 = vpack.c.bf16 %v1524_v45, %v1524_v45 }
 0xa8c   : > { %2241 = vmatmul.mubr.msk.bf16.vlgmr.msra.gmra.mrb[32].mxu1 %vm600_vm2, %v1410_v40 }
 0xa8d   : > { %2252 = vmatprep.mubr.msk.bf16.mxu1 %vm2464_vm0, %v2463_v1 }
 0xaa8   : > { %v1637_v44 = vpop.xlane.xlu1 %1636 }
 0xaa9   : > { %2393 = vrcp.f32 %v1637_v44 }
 0xaac   : > { %v1527_v46 = vpop.permute.xlu1 %1526 }
 0xaad   : > { %v1532_v47 = vsel %vm664_vm3, %v1527_v46, 0 }
 0xaae   : > { %2251 = vmatpush3.bf16.msra.mxu1 %v1532_v47 }
 0xaaf   : > { %2262 = vmatprep.subr.bf16.mxu1 %v2463_v1 }
 0xab1   : > { %2253 = vmatmul.mubr.msk.bf16.vlgmr.msra.gmra.mrb[36].mxu1 %vm600_vm2, %v1525_v41 }
 0xab2   : > { %2263 = vmatpush3.bf16.msra.mxu1 %v1647_v49  ;;  %2264 = vmatprep.mubr.msk.bf16.mxu1 %vm2464_vm0, %v2463_v1 }
 0xab3   : > { %v2394_v50 = vpop.eup %2393  ;;  %2276 = vmatprep.subr.bf16.mxu1 %v2463_v1 }
 0xab4   : > { %v1639_v51 = vmul.f32 %v2394_v50, %v2386_v28  ;;  %v2355_v28 = vld [vmem:[%s2971_s8] sm:$0xff]  }
 0xab6   : > { %v1640_v52 = vpack.c.bf16 %v1639_v51, %v1639_v51 }
 0xab9   : > { %2265 = vmatmul.mubr.msk.bf16.vlgmr.msra.gmra.mrb[40].mxu1 %vm600_vm2, %v1640_v52 }
 0xaba   : > { %2280 = vmatprep.mubr.msk.bf16.mxu1 %vm2464_vm0, %v2463_v1  ;;  %2277 = vmatpush3.bf16.msra.mxu1 %v2355_v28 }
 0xabb   : > { %2278 = vmatprep.subr.bf16.mxu1 %v2463_v1 }
 0xb57   : > { %v1341_v42 = vpop.f32.mrb[28].mxu1 }
 0xb58   : > { %1347 = vst.msk [vmem:[#allocation2] sm:$0xff] %vm600_vm2, %v1341_v42  ;;  %v2230_v53 = vpop.f32.mrb[29].mxu1 }
 0xb59   : > { %v1344_v54 = vpop.f32.mrb[30].mxu1 }
 0xb5a   : > { %v2231_v55 = vpop.f32.mrb[31].mxu1 }
 0xb5f   : > { %v1453_v57 = vpop.f32.mrb[32].mxu1 }
 0xb60   : > { %1460 = vrot.lane.b32.xlu1 %v1453_v57, %s3013_s27  ;;  %v2242_v58 = vpop.f32.mrb[33].mxu1 }
 0xb61   : > { %v1456_v59 = vpop.f32.mrb[34].mxu1 }
 0xb62   : > { %v2243_v0 = vpop.f32.mrb[35].mxu1 }
 0xb84   : > { %v1568_v60 = vpop.f32.mrb[36].mxu1 }
 0xb85   : > { %1575 = vrot.lane.b32.xlu0 %v1568_v60, %s3014_s26  ;;  %v2254_v61 = vpop.f32.mrb[37].mxu1 }
 0xb86   : > { %v1571_v62 = vpop.f32.mrb[38].mxu1 }
 0xb87   : > { %v2255_v63 = vpop.f32.mrb[39].mxu1 }
 0xb8c   : > { %v1683_v2 = vpop.f32.mrb[40].mxu1 }
 0xb8d   : > { %1690 = vrot.lane.b32.xlu1 %v1683_v2, %s3015_s18  ;;  %v2266_v3 = vpop.f32.mrb[41].mxu1  ;;  %s2920_s18 = scalar_lea.hbm %s2977_s14, %s2082_s21 }
 0xb8e   : > { %v1686_v5 = vpop.f32.mrb[42].mxu1 }
 0xb8f   : > { %v2267_v6 = vpop.f32.mrb[43].mxu1 }
 0xbd2   : > { %v1461_v7 = vpop.permute.xlu1 %1460 }
 0xbd3   : > { %1463 = vst.msk [vmem:[#allocation2] sm:$0xff] %vm823_vm4, %v1461_v7 }
 0xbf7   : > { %v1576_v8 = vpop.permute.xlu0 %1575 }
 0xbf8   : > { %1578 = vst.msk [vmem:[#allocation2] sm:$0xff] %vm939_vm5, %v1576_v8 }
 0xbff   : > { %v1691_v10 = vpop.permute.xlu1 %1690 }
 0xc00   : > { %1693 = vst.msk [vmem:[#allocation2] sm:$0xff] %vm1055_vm6, %v1691_v10 }
 0xc07   : > { %v1694_v11 = vld [vmem:[#allocation2] sm:$0xff] }
 0xc08   : > { %v1695_v12 = vpack.c.bf16 %v1694_v11, %v1694_v11 }
 0xc0a   : > { %2273 = vmatmul.mubr.msk.bf16.vlgmr.msra.gmra.mrb[36].mxu0 %vm552_vm1, %v1695_v12 }
 0xc0b   : > { %2292 = vmatprep.mubr.msk.bf16.mxu0 %vm2464_vm0, %v2463_v1 }
 0xcdd   : > { %v1733_v13 = vpop.f32.mrb[36].mxu0 }
 0xcde   : > { %v1734_v15 = vadd.f32 %v2755_v56, %v1733_v13  ;;  %v2274_v16 = vpop.f32.mrb[37].mxu0  ;;  %v2356_v56 = vld [vmem:[%s2971_s8 + $0x8] sm:$0xff]  }
 0xcdf   : > { %v1736_v17 = vpop.f32.mrb[38].mxu0  ;;  %2279 = vmatpush3.bf16.msra.mxu1 %v2356_v56 }
 0xce0   : > { %v2275_v18 = vpop.f32.mrb[39].mxu0  ;;  %v1739_v19 = vadd.f32 %v1734_v15, %v2791_v23  ;;  %v2357_v23 = vld [vmem:[%s2973_s10] sm:$0xff]  }
 0xce1   : > { %2285 = vmatpush3.bf16.msra.mxu0 %v2357_v23 }
 0xce2   : > { %v1740_v9 = vsel %vm552_vm1, %v1739_v19, 0.0  ;;  %2286 = vmatprep.subr.bf16.mxu0 %v2463_v1 }
 0xce3   : > { %1741 = vadd.xlane.f32.xlu0 %v1740_v9 }
 0xce5   : > { %2287 = vmatpush3.bf16.msra.mxu0 %v2358_v29 }
 0xce6   : > { %2288 = vmatprep.subr.bf16.mxu0 %v2463_v1 }
 0xce9   : > { %2289 = vmatpush3.bf16.msra.mxu0 %v2359_v37 }
 0xcea   : > { %2290 = vmatprep.subr.bf16.mxu0 %v2463_v1  ;;  %v2075_v1 = vld [vmem:[%s2974_s11] ss:$0 sm:$0xff] }
 0xced   : > { %2291 = vmatpush3.bf16.msra.mxu0 %v2360_v38 }
 0xd70   : > { %v1742_v22 = vpop.xlane.xlu0 %1741 }
 0xd71   : > { %v1743_v24 = vmul.f32 0.03125, %v1742_v22 }
 0xd73   : > { %v1744_v25 = vsub.f32 %v1739_v19, %v1743_v24 }
 0xd75   : > { %v1745_v26 = vmul.f32 %v1744_v25, %v1744_v25 }
 0xd77   : > { %v1746_v27 = vsel %vm552_vm1, %v1745_v26, 0.0 }
 0xd78   : > { %1747 = vadd.xlane.f32.xlu1 %v1746_v27 }
 0xe05   : > { %v1748_v30 = vpop.xlane.xlu1 %1747 }
 0xe06   : > { %v1749_v31 = vmul.f32 0.03125, %v1748_v30 }
 0xe08   : > { %v1750_v32 = vadd.f32 1e-05, %v1749_v31 }
 0xe0a   : > { %2395 = vrsqrt.f32 %v1750_v32 }
 0xe14   : > { %v2396_v33 = vpop.eup %2395 }
 0xe15   : > { %v1752_v34 = vmul.f32 %v2396_v33, %v1744_v25 }
 0xe17   : > { %v1753_v4 = vmul.f32 %v2782_v20, %v1752_v34 }
 0xe19   : > { %v1754_v35 = vadd.f32 %v2787_v21, %v1753_v4 }
 0xe1b   : > { %v1755_v36 = vpack.c.bf16 %v1754_v35, %v1754_v35 }
 0xe1d   : > { %2281 = vmatmul.mubr.msk.bf16.vlgmr.msra.gmra.mrb[44].mxu1 %vm552_vm1, %v1755_v36 }
 0xef0   : > { %v1816_v14 = vpop.f32.mrb[44].mxu1 }
 0xef1   : > { %v1817_v40 = vadd.f32 %v2071_v39, %v1816_v14  ;;  %v2282_v43 = vpop.f32.mrb[45].mxu1 }
 0xef2   : > { %v1819_v44 = vpop.f32.mrb[46].mxu1 }
 0xef3   : > { %v1822_v45 = vmax.f32 %v1817_v40, 0.0  ;;  %v2283_v46 = vpop.f32.mrb[47].mxu1 }
 0xef5   : > { %v1823_v47 = vpack.c.bf16 %v1822_v45, %v1822_v45 }
 0xef7   : > { %2293 = vmatmul.mubr.msk.bf16.vlgmr.msra.gmra.mrb[40].mxu0 %vm1863_vm7, %v1823_v47 }
 0xfca   : > { %v1901_v48 = vpop.f32.mrb[40].mxu0 }
 0xfcb   : > { %v1902_v41 = vadd.f32 %v2075_v1, %v1901_v48  ;;  %v2294_v49 = vpop.f32.mrb[41].mxu0 }
 0xfcc   : > { %v1904_v50 = vpop.f32.mrb[42].mxu0 }
 0xfcd   : > { %v2295_v51 = vpop.f32.mrb[43].mxu0  ;;  %v1907_v52 = vadd.f32 %v1902_v41, %v1754_v35 }
 0xfcf   : > { %v1908_v42 = vsel %vm552_vm1, %v1907_v52, 0.0 }
 0xfd0   : > { %1909 = vadd.xlane.f32.xlu0 %v1908_v42 }
0x105d   : > { %v1910_v53 = vpop.xlane.xlu0 %1909 }
0x105e   : > { %v1911_v54 = vmul.f32 0.03125, %v1910_v53 }
0x1060   : > { %v1912_v55 = vsub.f32 %v1907_v52, %v1911_v54 }
0x1062   : > { %v1913_v57 = vmul.f32 %v1912_v55, %v1912_v55 }
0x1064   : > { %v1914_v58 = vsel %vm552_vm1, %v1913_v57, 0.0 }
0x1065   : > { %1915 = vadd.xlane.f32.xlu0 %v1914_v58 }
0x10f2   : > { %v1916_v59 = vpop.xlane.xlu0 %1915 }
0x10f3   : > { %v1917_v0 = vmul.f32 0.03125, %v1916_v59 }
0x10f5   : > { %v1918_v60 = vadd.f32 1e-05, %v1917_v0 }
0x10f7   : > { %2397 = vrsqrt.f32 %v1918_v60 }
0x1101   : > { %v2398_v61 = vpop.eup %2397 }
0x1102   : > { %v1920_v62 = vmul.f32 %v2398_v61, %v1912_v55 }
0x1104   : > { %v1921_v63 = vmul.f32 %v2782_v20, %v1920_v62 }
0x1106   : > { %v1922_v2 = vadd.f32 %v2787_v21, %v1921_v63 }
0x1108   : > { %1923 = vst.msk [vmem:[%s497_s0] sm:$0xff] %vm552_vm1, %v1922_v2 }
0x1109   : > { %2412 = shalt.err (!%p2409_p3)
}
0x110a   : > { %s2413_s28 = scalar_lea.hbm %s2920_s18, 128  ;;  %s2417_s27 = scalar_lea.hbm %s2977_s14, 256 }
0x110b   : > { %p2414_p4 = scmp.ne.s32.totalorder %s2920_s18, %s2413_s28  ;;  %p2418_p9 = scmp.lt.u32.totalorder %s2920_s18, %s2977_s14 }
0x110c   : > { %p2419_p10 = scmp.lt.u32.totalorder %s2417_s27, %s2413_s28  ;;  %p2421_p12 = scmp.lt.u32.totalorder %s2413_s28, %s2920_s18 }
0x110d   : > { %p2415_p7 = pnand %p2414_p4, %p2593_p5 }
0x110e   : > { %p2420_p11 = por %p2419_p10, %p2418_p9 }
0x110f   : > { %p2416_p8 = pneg %p2415_p7 }
0x1110   : > { %p2422_p13 = por %p2421_p12, %p2420_p11 }
0x1112   : > { %p2423_p0 = pnand %p2422_p13, %p2416_p8 }
0x1114   : > { %2426 = shalt.err (!%p2423_p0)
}
0x1115   : > { %2296 = dma.vmem_to_hbm [thread:$0]  (%p2593_p5), %s2922_s25, 128, %s2920_s18, %s1925_s1  }
0x1116 PF: > { %p2302_p1 = scmp.ge.s32.totalorder %s2461_s16, 2  ;;  %s1950_s3 = sand.u32 1, %s2449_s29  }
0x1117   : > { %s1951_s17 = scalar_lea.sflag [#allocation4], %s1950_s3 }
0x1118   : > { %p2299_p2 = pnand %p2302_p1, %p2597_p6 }
0x111a   : > { %2444 = dma.done.wait (!%p2299_p2), %s1951_s17, 128  }
0x111b   : > { %2446 = vsyncadd (!%p2299_p2), %s1951_s17, 4294967168  ;;  %p24_p3 = scmp.ge.s32.totalorder %s2580_s19, 4   ;;  %s3016_s29 = smov %s2453_s30 }
0x111c   : > { %s3017_s30 = smov %s2457_s15  ;;  %s3018_s15 = smov %s2591_s22 }
0x111d   : > { %s3019_s16 = smov %s2580_s19  ;;  %26 = sbr.rel (!%p24_p3) target bundleno = 8 (0x8), region = 120 }
0x1124   :  { %1956 = vsyncpa [#allocation4], 1 }
0x1125   :  { %1958 = vsyncpa [#allocation4 + $0x1], 1 }

</bundles_post_ra>
